<compile_context>
chip_gen: v5e
topology: v5e:2x2
jax: 0.10.0
libtpu: 0.0.40
codegen_flags: <defaults>
</compile_context>

<pallas_src>
import functools

import jax
import jax.numpy as jnp
from jax.experimental import pallas as pl
from jax.experimental.pallas import tpu as pltpu

INPUT_DIM = 4
HIDDEN_DIM = 512
OUTPUT_DIM = 5
LN_EPS = 1e-5


def _round_up(n, m):
    return ((n + m - 1) // m) * m


def mlp_kernel(x_ref, w1_ref, b1_ref, ln_g_ref, ln_b_ref,
               w2_ref, b2_ref, w3_ref, b3_ref, o_ref):
    # ---- input clamp (f32), then bf16 operand for the MXU ----
    x = jnp.clip(x_ref[...], 0.0, 1.0).astype(jnp.bfloat16)

    # ---- encoder: Linear(4,512) -> LayerNorm(512) -> GELU ----
    h = jnp.dot(x, w1_ref[...],
                preferred_element_type=jnp.float32,
                precision=jax.lax.Precision.DEFAULT) + b1_ref[...]
    mu = jnp.mean(h, axis=-1, keepdims=True)
    # One-pass variance E[h^2]-E[h]^2: benign here (h is O(1) after the [0,1]
    # clamp) and its error is dwarfed by the intentional bf16 GEMM rounding.
    var = jnp.mean(h * h, axis=-1, keepdims=True) - mu * mu
    h = (h - mu) * jax.lax.rsqrt(var + LN_EPS)
    h = h * ln_g_ref[...] + ln_b_ref[...]
    # tanh-approx GELU -> EUP slot (free filler next to the MXU/VALU work),
    # kept in f32 for v5e.
    h = jax.nn.gelu(h, approximate=True)

    # ---- transformer: Linear(512,512) -> GELU -> Dropout(eval: id) + residual
    t = jnp.dot(h.astype(jnp.bfloat16), w2_ref[...],
                preferred_element_type=jnp.float32,
                precision=jax.lax.Precision.DEFAULT) + b2_ref[...]
    h = jax.nn.gelu(t, approximate=True) + h

    # ---- decoder Linear(512,5) with GamutProjection pre-folded into w3/b3 ----
    y = jnp.dot(h.astype(jnp.bfloat16), w3_ref[...],
                preferred_element_type=jnp.float32,
                precision=jax.lax.Precision.DEFAULT) + b3_ref[...]

    # sigmoid already lands in (0,1); the module's trailing clamp is a no-op.
    o_ref[...] = jax.nn.sigmoid(y)


def _choose_tile(B, tb):
    """Batch-tile size: >=2 grid steps whenever B > 8 (so both v7x
    TensorCores get a tile), minimal padding, 8-row aligned, capped at tb."""
    nb = max(1, pl.cdiv(B, tb))
    if nb == 1 and B > 8:
        nb = 2
    return min(tb, _round_up(pl.cdiv(B, nb), 8))


@functools.partial(jax.jit, static_argnames=("tb",))
def mlp_forward(x, params, tb=512):
    (w1, b1, ln_g, ln_b, w2, b2, w3, b3, proj) = params

    # Fold the 5x5 GamutProjection into the decoder:
    #   (h@w3 + b3)@proj == h@(w3@proj) + (b3@proj)
    # Fold in f32, then store matmul weights as bf16 (MXU-native on all three
    # generations; also halves resident-weight DMA bytes).
    w3p = (w3 @ proj).astype(jnp.bfloat16)
    b3p = b3 @ proj
    w1_bf = w1.astype(jnp.bfloat16)
    w2_bf = w2.astype(jnp.bfloat16)

    B = x.shape[0]
    TB = _choose_tile(B, tb)
    B_pad = _round_up(B, TB)
    if B_pad != B:
        x = jnp.pad(x, ((0, B_pad - B), (0, 0)))
    nb = B_pad // TB

    # Weights/biases: full-array block, constant index_map -> VMEM resident.
    resident = lambda arr: pl.BlockSpec(arr.shape, lambda i: (0,) * arr.ndim)

    out = pl.pallas_call(
        mlp_kernel,
        out_shape=jax.ShapeDtypeStruct((B_pad, OUTPUT_DIM), jnp.float32),
        grid=(nb,),
        in_specs=[pl.BlockSpec((TB, INPUT_DIM), lambda i: (i, 0)),
                  resident(w1_bf), resident(b1), resident(ln_g), resident(ln_b),
                  resident(w2_bf), resident(b2), resident(w3p), resident(b3p)],
        out_specs=pl.BlockSpec((TB, OUTPUT_DIM), lambda i: (i, 0)),
        compiler_params=pltpu.CompilerParams(
            dimension_semantics=("parallel",),
            vmem_limit_bytes=32 << 20),
    )(x, w1_bf, b1, ln_g, ln_b, w2_bf, b2, w3p, b3p)
    return out[:B]


def init_params(key):
    """Deterministic synthetic parameters mirroring the PyTorch module shapes."""
    k1, k2, k3 = jax.random.split(key, 3)

    def linear_init(k, fan_in, fan_out):
        bound = 1.0 / jnp.sqrt(fan_in)
        kw, kb = jax.random.split(k)
        w = jax.random.uniform(kw, (fan_in, fan_out), jnp.float32, -bound, bound)
        b = jax.random.uniform(kb, (1, fan_out), jnp.float32, -bound, bound)
        return w, b

    w1, b1 = linear_init(k1, INPUT_DIM, HIDDEN_DIM)
    ln_g = jnp.ones((1, HIDDEN_DIM), jnp.float32)
    ln_b = jnp.zeros((1, HIDDEN_DIM), jnp.float32)
    w2, b2 = linear_init(k2, HIDDEN_DIM, HIDDEN_DIM)
    w3, b3 = linear_init(k3, HIDDEN_DIM, OUTPUT_DIM)
    proj = jnp.eye(OUTPUT_DIM, dtype=jnp.float32)  # nn.Parameter(torch.eye(5))
    return (w1, b1, ln_g, ln_b, w2, b2, w3, b3, proj)


def reference_forward(x, params):
    """Pure-JAX f32 reference matching the PyTorch forward exactly (erf GELU)."""
    (w1, b1, ln_g, ln_b, w2, b2, w3, b3, proj) = params
    x = jnp.clip(x, 0.0, 1.0)
    h = x @ w1 + b1
    mu = h.mean(-1, keepdims=True)
    var = ((h - mu) ** 2).mean(-1, keepdims=True)
    h = (h - mu) / jnp.sqrt(var + LN_EPS) * ln_g + ln_b
    h = jax.nn.gelu(h, approximate=False)
    t = jax.nn.gelu(h @ w2 + b2, approximate=False)
    h = t + h
    y = h @ w3 + b3
    y = y @ proj
    return jnp.clip(jax.nn.sigmoid(y), 0.0, 1.0)


if __name__ == "__main__":
    key = jax.random.PRNGKey(0)
    k_param, k_x, k_x2 = jax.random.split(key, 3)
    params = init_params(k_param)

    # Small batch: single-tile, DMA/overhead-bound regime.
    x_small = jax.random.normal(k_x, (8, INPUT_DIM), jnp.float32)
    out_small = mlp_forward(x_small, params)
    jax.block_until_ready(out_small)
    ref_small = reference_forward(x_small, params)
    assert out_small.shape == (8, OUTPUT_DIM)
    # bf16 MXU operands + tanh GELU vs the f32/erf reference -> looser tol.
    assert jnp.allclose(out_small, ref_small, atol=2e-2, rtol=0.0), "mismatch (B=8)"

    # Multi-tile path: exercises padding + the >=2 parallel batch tiles.
    x_multi = jax.random.normal(k_x2, (48, INPUT_DIM), jnp.float32)
    out_multi = mlp_forward(x_multi, params)
    jax.block_until_ready(out_multi)
    ref_multi = reference_forward(x_multi, params)
    assert out_multi.shape == (48, OUTPUT_DIM)
    assert jnp.allclose(out_multi, ref_multi, atol=2e-2, rtol=0.0), "mismatch (B=48)"

    print("KERNEL_OK")
</pallas_src>

<mosaic_0001>
module attributes {stable_mosaic.version = 11 : i64} {
  func.func @mlp_kernel(%arg0: i32, %arg1: memref<8x4xf32, #tpu.memory_space<vmem>>, %arg2: memref<4x512xbf16, #tpu.memory_space<vmem>>, %arg3: memref<1x512xf32, #tpu.memory_space<vmem>>, %arg4: memref<1x512xf32, #tpu.memory_space<vmem>>, %arg5: memref<1x512xf32, #tpu.memory_space<vmem>>, %arg6: memref<512x512xbf16, #tpu.memory_space<vmem>>, %arg7: memref<1x512xf32, #tpu.memory_space<vmem>>, %arg8: memref<512x5xbf16, #tpu.memory_space<vmem>>, %arg9: memref<1x5xf32, #tpu.memory_space<vmem>>, %arg10: memref<8x5xf32, #tpu.memory_space<vmem>>) attributes {dimension_semantics = [#tpu.dimension_semantics<parallel>], iteration_bounds = array<i64: 1>, scalar_prefetch = 0 : i64, scratch_operands = 0 : i64, tpu.core_type = #tpu.core_type<tc>, window_params = [{transform_indices = @transform_0, window_bounds = array<i64: 8, 4>}, {pipeline_mode = #tpu.pipeline_mode<synchronous>, transform_indices = @transform_1, window_bounds = array<i64: 4, 512>}, {pipeline_mode = #tpu.pipeline_mode<synchronous>, transform_indices = @transform_2, window_bounds = array<i64: 1, 512>}, {pipeline_mode = #tpu.pipeline_mode<synchronous>, transform_indices = @transform_3, window_bounds = array<i64: 1, 512>}, {pipeline_mode = #tpu.pipeline_mode<synchronous>, transform_indices = @transform_4, window_bounds = array<i64: 1, 512>}, {pipeline_mode = #tpu.pipeline_mode<synchronous>, transform_indices = @transform_5, window_bounds = array<i64: 512, 512>}, {pipeline_mode = #tpu.pipeline_mode<synchronous>, transform_indices = @transform_6, window_bounds = array<i64: 1, 512>}, {pipeline_mode = #tpu.pipeline_mode<synchronous>, transform_indices = @transform_7, window_bounds = array<i64: 512, 5>}, {pipeline_mode = #tpu.pipeline_mode<synchronous>, transform_indices = @transform_8, window_bounds = array<i64: 1, 5>}, {transform_indices = @transform_9, window_bounds = array<i64: 8, 5>}]} {
    %c0 = arith.constant 0 : index
    %c0_0 = arith.constant 0 : index
    %0 = vector.load %arg1[%c0, %c0_0] : memref<8x4xf32, #tpu.memory_space<vmem>>, vector<8x4xf32>
    %cst = arith.constant 0.000000e+00 : f32
    %cst_1 = arith.constant 1.000000e+00 : f32
    %1 = vector.broadcast %cst : f32 to vector<8x4xf32>
    %2 = arith.maximumf %1, %0 : vector<8x4xf32>
    %3 = vector.broadcast %cst_1 : f32 to vector<8x4xf32>
    %4 = arith.minimumf %3, %2 : vector<8x4xf32>
    %5 = arith.truncf %4 : vector<8x4xf32> to vector<8x4xbf16>
    %c0_2 = arith.constant 0 : index
    %c0_3 = arith.constant 0 : index
    %6 = vector.load %arg2[%c0_2, %c0_3] : memref<4x512xbf16, #tpu.memory_space<vmem>>, vector<4x512xbf16>
    %cst_4 = arith.constant dense<0.000000e+00> : vector<8x512xf32>
    %7 = tpu.matmul %5, %6, %cst_4 {dimension_numbers = #tpu.dot_dimension_numbers<[1], [0], [0], [1], [0, 0, 1, 1], [], []>} : vector<8x4xbf16>, vector<4x512xbf16>, vector<8x512xf32> -> vector<8x512xf32>
    %c0_5 = arith.constant 0 : index
    %c0_6 = arith.constant 0 : index
    %8 = vector.load %arg3[%c0_5, %c0_6] : memref<1x512xf32, #tpu.memory_space<vmem>>, vector<1x512xf32>
    %9 = vector.broadcast %8 : vector<1x512xf32> to vector<8x512xf32>
    %10 = arith.addf %7, %9 : vector<8x512xf32>
    %cst_7 = arith.constant dense<0.000000e+00> : vector<8xf32>
    %11 = vector.multi_reduction <add>, %10, %cst_7 [1] : vector<8x512xf32> to vector<8xf32>
    %12 = vector.shape_cast %11 : vector<8xf32> to vector<8x1xf32>
    %cst_8 = arith.constant 5.120000e+02 : f32
    %13 = vector.broadcast %cst_8 : f32 to vector<8x1xf32>
    %14 = arith.divf %12, %13 : vector<8x1xf32>
    %15 = arith.mulf %10, %10 : vector<8x512xf32>
    %cst_9 = arith.constant dense<0.000000e+00> : vector<8xf32>
    %16 = vector.multi_reduction <add>, %15, %cst_9 [1] : vector<8x512xf32> to vector<8xf32>
    %17 = vector.shape_cast %16 : vector<8xf32> to vector<8x1xf32>
    %cst_10 = arith.constant 5.120000e+02 : f32
    %18 = vector.broadcast %cst_10 : f32 to vector<8x1xf32>
    %19 = arith.divf %17, %18 : vector<8x1xf32>
    %20 = arith.mulf %14, %14 : vector<8x1xf32>
    %21 = arith.subf %19, %20 : vector<8x1xf32>
    %22 = vector.broadcast %14 : vector<8x1xf32> to vector<8x512xf32>
    %23 = arith.subf %10, %22 : vector<8x512xf32>
    %cst_11 = arith.constant 9.99999974E-6 : f32
    %24 = vector.broadcast %cst_11 : f32 to vector<8x1xf32>
    %25 = arith.addf %21, %24 : vector<8x1xf32>
    %26 = math.rsqrt %25 : vector<8x1xf32>
    %27 = vector.broadcast %26 : vector<8x1xf32> to vector<8x512xf32>
    %28 = arith.mulf %23, %27 : vector<8x512xf32>
    %c0_12 = arith.constant 0 : index
    %c0_13 = arith.constant 0 : index
    %29 = vector.load %arg4[%c0_12, %c0_13] : memref<1x512xf32, #tpu.memory_space<vmem>>, vector<1x512xf32>
    %30 = vector.broadcast %29 : vector<1x512xf32> to vector<8x512xf32>
    %31 = arith.mulf %28, %30 : vector<8x512xf32>
    %c0_14 = arith.constant 0 : index
    %c0_15 = arith.constant 0 : index
    %32 = vector.load %arg5[%c0_14, %c0_15] : memref<1x512xf32, #tpu.memory_space<vmem>>, vector<1x512xf32>
    %33 = vector.broadcast %32 : vector<1x512xf32> to vector<8x512xf32>
    %34 = arith.addf %31, %33 : vector<8x512xf32>
    %35 = arith.mulf %34, %34 : vector<8x512xf32>
    %36 = arith.mulf %34, %35 : vector<8x512xf32>
    %cst_16 = arith.constant 4.471500e-02 : f32
    %37 = vector.broadcast %cst_16 : f32 to vector<8x512xf32>
    %38 = arith.mulf %37, %36 : vector<8x512xf32>
    %39 = arith.addf %34, %38 : vector<8x512xf32>
    %cst_17 = arith.constant 0.797884583 : f32
    %40 = vector.broadcast %cst_17 : f32 to vector<8x512xf32>
    %41 = arith.mulf %40, %39 : vector<8x512xf32>
    %42 = math.tanh %41 : vector<8x512xf32>
    %cst_18 = arith.constant 1.000000e+00 : f32
    %43 = vector.broadcast %cst_18 : f32 to vector<8x512xf32>
    %44 = arith.addf %43, %42 : vector<8x512xf32>
    %cst_19 = arith.constant 5.000000e-01 : f32
    %45 = vector.broadcast %cst_19 : f32 to vector<8x512xf32>
    %46 = arith.mulf %45, %44 : vector<8x512xf32>
    %47 = arith.mulf %34, %46 : vector<8x512xf32>
    %48 = arith.truncf %47 : vector<8x512xf32> to vector<8x512xbf16>
    %c0_20 = arith.constant 0 : index
    %c0_21 = arith.constant 0 : index
    %49 = vector.load %arg6[%c0_20, %c0_21] : memref<512x512xbf16, #tpu.memory_space<vmem>>, vector<512x512xbf16>
    %cst_22 = arith.constant dense<0.000000e+00> : vector<8x512xf32>
    %50 = tpu.matmul %48, %49, %cst_22 {dimension_numbers = #tpu.dot_dimension_numbers<[1], [0], [0], [1], [0, 0, 1, 1], [], []>} : vector<8x512xbf16>, vector<512x512xbf16>, vector<8x512xf32> -> vector<8x512xf32>
    %c0_23 = arith.constant 0 : index
    %c0_24 = arith.constant 0 : index
    %51 = vector.load %arg7[%c0_23, %c0_24] : memref<1x512xf32, #tpu.memory_space<vmem>>, vector<1x512xf32>
    %52 = vector.broadcast %51 : vector<1x512xf32> to vector<8x512xf32>
    %53 = arith.addf %50, %52 : vector<8x512xf32>
    %54 = arith.mulf %53, %53 : vector<8x512xf32>
    %55 = arith.mulf %53, %54 : vector<8x512xf32>
    %cst_25 = arith.constant 4.471500e-02 : f32
    %56 = vector.broadcast %cst_25 : f32 to vector<8x512xf32>
    %57 = arith.mulf %56, %55 : vector<8x512xf32>
    %58 = arith.addf %53, %57 : vector<8x512xf32>
    %cst_26 = arith.constant 0.797884583 : f32
    %59 = vector.broadcast %cst_26 : f32 to vector<8x512xf32>
    %60 = arith.mulf %59, %58 : vector<8x512xf32>
    %61 = math.tanh %60 : vector<8x512xf32>
    %cst_27 = arith.constant 1.000000e+00 : f32
    %62 = vector.broadcast %cst_27 : f32 to vector<8x512xf32>
    %63 = arith.addf %62, %61 : vector<8x512xf32>
    %cst_28 = arith.constant 5.000000e-01 : f32
    %64 = vector.broadcast %cst_28 : f32 to vector<8x512xf32>
    %65 = arith.mulf %64, %63 : vector<8x512xf32>
    %66 = arith.mulf %53, %65 : vector<8x512xf32>
    %67 = arith.addf %66, %47 : vector<8x512xf32>
    %68 = arith.truncf %67 : vector<8x512xf32> to vector<8x512xbf16>
    %c0_29 = arith.constant 0 : index
    %c0_30 = arith.constant 0 : index
    %69 = vector.load %arg8[%c0_29, %c0_30] : memref<512x5xbf16, #tpu.memory_space<vmem>>, vector<512x5xbf16>
    %cst_31 = arith.constant dense<0.000000e+00> : vector<8x5xf32>
    %70 = tpu.matmul %68, %69, %cst_31 {dimension_numbers = #tpu.dot_dimension_numbers<[1], [0], [0], [1], [0, 0, 1, 1], [], []>} : vector<8x512xbf16>, vector<512x5xbf16>, vector<8x5xf32> -> vector<8x5xf32>
    %c0_32 = arith.constant 0 : index
    %c0_33 = arith.constant 0 : index
    %71 = vector.load %arg9[%c0_32, %c0_33] : memref<1x5xf32, #tpu.memory_space<vmem>>, vector<1x5xf32>
    %72 = vector.broadcast %71 : vector<1x5xf32> to vector<8x5xf32>
    %73 = arith.addf %70, %72 : vector<8x5xf32>
    %74 = arith.negf %73 : vector<8x5xf32>
    %75 = math.exp %74 : vector<8x5xf32>
    %cst_34 = arith.constant 1.000000e+00 : f32
    %76 = vector.broadcast %cst_34 : f32 to vector<8x5xf32>
    %77 = arith.addf %76, %75 : vector<8x5xf32>
    %78 = arith.divf %76, %77 : vector<8x5xf32>
    %c0_35 = arith.constant 0 : index
    %c0_36 = arith.constant 0 : index
    %79 = vector.load %arg10[%c0_35, %c0_36] : memref<8x5xf32, #tpu.memory_space<vmem>>, vector<8x5xf32>
    tpu.vector_store %arg10[%c0_35, %c0_36], %78 {strides = array<i32>} : memref<8x5xf32, #tpu.memory_space<vmem>>, vector<8x5xf32>,
    return
  }
  func.func @transform_0(%arg0: i32) -> (i32, i32) {
    %c0_i32 = arith.constant 0 : i32
    %c0_i32_0 = arith.constant 0 : i32
    return %arg0, %c0_i32 : i32, i32
  }
  func.func @transform_1(%arg0: i32) -> (i32, i32) {
    %c0_i32 = arith.constant 0 : i32
    %c0_i32_0 = arith.constant 0 : i32
    %c0_i32_1 = arith.constant 0 : i32
    return %c0_i32, %c0_i32_0 : i32, i32
  }
  func.func @transform_2(%arg0: i32) -> (i32, i32) {
    %c0_i32 = arith.constant 0 : i32
    %c0_i32_0 = arith.constant 0 : i32
    %c0_i32_1 = arith.constant 0 : i32
    return %c0_i32, %c0_i32_0 : i32, i32
  }
  func.func @transform_3(%arg0: i32) -> (i32, i32) {
    %c0_i32 = arith.constant 0 : i32
    %c0_i32_0 = arith.constant 0 : i32
    %c0_i32_1 = arith.constant 0 : i32
    return %c0_i32, %c0_i32_0 : i32, i32
  }
  func.func @transform_4(%arg0: i32) -> (i32, i32) {
    %c0_i32 = arith.constant 0 : i32
    %c0_i32_0 = arith.constant 0 : i32
    %c0_i32_1 = arith.constant 0 : i32
    return %c0_i32, %c0_i32_0 : i32, i32
  }
  func.func @transform_5(%arg0: i32) -> (i32, i32) {
    %c0_i32 = arith.constant 0 : i32
    %c0_i32_0 = arith.constant 0 : i32
    %c0_i32_1 = arith.constant 0 : i32
    return %c0_i32, %c0_i32_0 : i32, i32
  }
  func.func @transform_6(%arg0: i32) -> (i32, i32) {
    %c0_i32 = arith.constant 0 : i32
    %c0_i32_0 = arith.constant 0 : i32
    %c0_i32_1 = arith.constant 0 : i32
    return %c0_i32, %c0_i32_0 : i32, i32
  }
  func.func @transform_7(%arg0: i32) -> (i32, i32) {
    %c0_i32 = arith.constant 0 : i32
    %c0_i32_0 = arith.constant 0 : i32
    %c0_i32_1 = arith.constant 0 : i32
    return %c0_i32, %c0_i32_0 : i32, i32
  }
  func.func @transform_8(%arg0: i32) -> (i32, i32) {
    %c0_i32 = arith.constant 0 : i32
    %c0_i32_0 = arith.constant 0 : i32
    %c0_i32_1 = arith.constant 0 : i32
    return %c0_i32, %c0_i32_0 : i32, i32
  }
  func.func @transform_9(%arg0: i32) -> (i32, i32) {
    %c0_i32 = arith.constant 0 : i32
    %c0_i32_0 = arith.constant 0 : i32
    return %arg0, %c0_i32 : i32, i32
  }
}

</mosaic_0001>

<bundles_post_ra>
// kernel: mlp_forward.1
= control target key start
LH: loop header
LB: loop body
LE: loop exit
PB: predicated region body
PF: predicated region fallthrough
CT: control target
= control target key end

     0   :  { %s3511_s0 = inlined_call_operand.vmem [shape: f32[8,4], index: 0, kind: input, shape index: {}]   ;;  %s3512_s1 = inlined_call_operand.vmem [shape: bf16[4,512], index: 1, kind: input, shape index: {}]   ;;  %s3513_s2 = inlined_call_operand.vmem [shape: f32[1,512], index: 2, kind: input, shape index: {}]   ;;  %s3514_s3 = inlined_call_operand.vmem [shape: f32[1,512], index: 3, kind: input, shape index: {}]   ;;  %s3515_s4 = inlined_call_operand.vmem [shape: f32[1,512], index: 4, kind: input, shape index: {}]   ;;  %s3516_s5 = inlined_call_operand.vmem [shape: bf16[512,512], index: 5, kind: input, shape index: {}]   ;;  %s3517_s6 = inlined_call_operand.vmem [shape: f32[1,512], index: 6, kind: input, shape index: {}]   ;;  %s3518_s7 = inlined_call_operand.vmem [shape: bf16[512,5], index: 7, kind: input, shape index: {}]   ;;  %s3519_s8 = inlined_call_operand.vmem [shape: f32[1,5], index: 8, kind: input, shape index: {}]   ;;  %s3520_s9 = inlined_call_operand.hbm [shape: f32[8,5], index: 9, kind: output, shape index: {}]  }
   0x1   :  { %v38_v0 = vld [vmem:[%s3512_s1] sm:$0xff] }
   0x2   :  { %v34_v1 = vld [vmem:[%s3511_s0] sm:$0xff]  ;;  %50 = vst [vmem:[#allocation1] ss:$4 sm:$0xff] %v38_v0 }
   0x3   :  { %v35_v2 = vmax.f32 %v34_v1, 0.0 }
   0x4   :  { %14 = vsyncpa [#allocation3], 0  ;;  %vm59_vm0 = vcmask 1041408   ;;  %vm55_vm1 = vcmask 31744   ;;  %v39_v13 = vld [vmem:[%s3513_s2] sm:$0xf] }
   0x5   :  { %v36_v3 = vmin.f32 %v35_v2, 1.0  ;;  %v41_v14 = vperm.slane %v39_v13, 0  ;;  %v42_v15 = vperm.slane %v39_v13, 1  ;;  %v43_v20 = vperm.slane %v39_v13, 2  ;;  %v1729_v40 = vld [vmem:[%s3516_s5 + $0xe0] sm:$0xf] }
   0x6   :  { %v44_v21 = vperm.slane %v39_v13, 3  ;;  %v2286_v41 = vld [vmem:[%s3516_s5 + $0xec] sm:$0xf0]  ;;  %v1857_v42 = vld [vmem:[%s3516_s5 + $0x1e0] sm:$0xf]  ;;  %v2469_v55 = vmov 512.0  }
   0x7   :  { %v37_v9 = vpack.c.bf16 %v36_v3, %v36_v3  ;;  %v1730_v43 = vor.u32 %v2286_v41, %v1729_v40  ;;  %v2318_v44 = vld [vmem:[%s3516_s5 + $0x1ec] sm:$0xf0]  ;;  %v1985_v45 = vld [vmem:[%s3516_s5 + $0x2e0] sm:$0xf]  ;;  %2419 = vrcp.f32 %v2469_v55  ;;  %s2470_s1 = smov [#allocation2]   ;;  %s1602_s13 = sshll.u32 %s3520_s9, 4  ;;  %s1603_s13 = int_to_ptr.hbm [resolvable:$true] %s1602_s13 }
   0x8   :  { %v2350_v46 = vld [vmem:[%s3516_s5 + $0x2ec] sm:$0xf0]  ;;  %v1858_v47 = vor.u32 %v2318_v44, %v1857_v42  ;;  %v2113_v49 = vld [vmem:[%s3516_s5 + $0x3e0] sm:$0xf]  ;;  %vm1593_vm9 = vcmask 39936  }
   0x9   :  { %v51_v4 = vld.sshfl [vmem:[#allocation1] sm:$0xff pattern:$0x73625140]  ;;  %v52_v5 = vld.sshfl [vmem:[#allocation1 + $0x8] sm:$0xff pattern:$0x73625140]  ;;  %v1986_v48 = vor.u32 %v2350_v46, %v1985_v45 }
   0xa   :  { %v60_v6 = vsel %vm59_vm0, %v51_v4, 0  ;;  %v62_v7 = vsel %vm59_vm0, %v52_v5, 0  ;;  %v53_v8 = vld.sshfl [vmem:[#allocation1 + $0x10] sm:$0xff pattern:$0x73625140] }
   0xb   :  { %75 = vmatpush.bf16.msra.mxu0 %v60_v6  ;;  %88 = vmatpush.bf16.msra.mxu1 %v62_v7  ;;  %v64_v10 = vsel %vm59_vm0, %v53_v8, 0  ;;  %v54_v11 = vld.sshfl [vmem:[#allocation1 + $0x18] sm:$0xff pattern:$0x73625140]  ;;  %v2382_v50 = vld [vmem:[%s3516_s5 + $0x3ec] sm:$0xf0] }
   0xc   :  { %101 = vmatpush.bf16.msra.mxu2 %v64_v10  ;;  %v66_v12 = vsel %vm59_vm0, %v54_v11, 0  ;;  %v2114_v51 = vor.u32 %v2382_v50, %v2113_v49  ;;  %v1713_v52 = vld [vmem:[%s3516_s5 + $0xc0] sm:$0xf]  ;;  %v2282_v53 = vld [vmem:[%s3516_s5 + $0xcc] sm:$0xf0] }
   0xd   :  { %114 = vmatpush.bf16.msra.mxu3 %v66_v12  ;;  %v1841_v54 = vld [vmem:[%s3516_s5 + $0x1c0] sm:$0xf]  ;;  %v1714_v56 = vor.u32 %v2282_v53, %v1713_v52  ;;  %v2314_v57 = vld [vmem:[%s3516_s5 + $0x1cc] sm:$0xf0]  ;;  %v2622_v12 = vpop.eup %2419 }
   0xe   :  { %1611 = vmatmul.msk.bf16.vlgmr.msra.gmra.mxu0 %vm55_vm1, %v37_v9  ;;  %1612 = vmatmul.msk.bf16.vlgmr.msra.gmra.mxu1 %vm55_vm1, %v37_v9  ;;  %v1969_v58 = vld [vmem:[%s3516_s5 + $0x2c0] sm:$0xf]  ;;  %v2346_v59 = vld [vmem:[%s3516_s5 + $0x2cc] sm:$0xf0]  ;;  %v1842_v60 = vor.u32 %v2314_v57, %v1841_v54  ;;  %vm130_vm2 = vweird.f32 %v2622_v12 }
   0xf   :  { %1613 = vmatmul.msk.bf16.vlgmr.msra.gmra.mxu2 %vm55_vm1, %v37_v9  ;;  %1010 = vmatpush.bf16.msrb.mxu0 %v1730_v43  ;;  %v1970_v61 = vor.u32 %v2346_v59, %v1969_v58  ;;  %v2097_v62 = vld [vmem:[%s3516_s5 + $0x3c0] sm:$0xf]  ;;  %v2378_v63 = vld [vmem:[%s3516_s5 + $0x3cc] sm:$0xf0] }
  0x10   :  { %1614 = vmatmul.msk.bf16.vlgmr.msra.gmra.mxu3 %vm55_vm1, %v37_v9  ;;  %1023 = vmatpush.bf16.msrb.mxu1 %v1858_v47  ;;  %v2098_v0 = vor.u32 %v2378_v63, %v2097_v62  ;;  %v1697_v1 = vld [vmem:[%s3516_s5 + $0xa0] sm:$0xf]  ;;  %v2278_v2 = vld [vmem:[%s3516_s5 + $0xac] sm:$0xf0] }
  0x11   :  { %1036 = vmatpush.bf16.msrb.mxu2 %v1986_v48  ;;  %1049 = vmatpush.bf16.msrb.mxu3 %v2114_v51  ;;  %v1825_v3 = vld [vmem:[%s3516_s5 + $0x1a0] sm:$0xf]  ;;  %v1698_v4 = vor.u32 %v2278_v2, %v1697_v1  ;;  %v2310_v5 = vld [vmem:[%s3516_s5 + $0x1ac] sm:$0xf0] }
  0x12   :  { %v1953_v6 = vld [vmem:[%s3516_s5 + $0x2a0] sm:$0xf]  ;;  %v2342_v7 = vld [vmem:[%s3516_s5 + $0x2ac] sm:$0xf0]  ;;  %v1826_v8 = vor.u32 %v2310_v5, %v1825_v3 }
  0x13   :  { %1011 = vmatpush.bf16.msrb.mxu0 %v1714_v56  ;;  %v1954_v9 = vor.u32 %v2342_v7, %v1953_v6  ;;  %v2081_v10 = vld [vmem:[%s3516_s5 + $0x3a0] sm:$0xf]  ;;  %v2374_v11 = vld [vmem:[%s3516_s5 + $0x3ac] sm:$0xf0] }
  0x14   :  { %1024 = vmatpush.bf16.msrb.mxu1 %v1842_v60  ;;  %v2082_v13 = vor.u32 %v2374_v11, %v2081_v10  ;;  %v2049_v41 = vld [vmem:[%s3516_s5 + $0x360] sm:$0xf]  ;;  %v2366_v42 = vld [vmem:[%s3516_s5 + $0x36c] sm:$0xf0] }
  0x15   :  { %1037 = vmatpush.bf16.msrb.mxu2 %v1970_v61  ;;  %1050 = vmatpush.bf16.msrb.mxu3 %v2098_v0  ;;  %v2050_v43 = vor.u32 %v2366_v42, %v2049_v41  ;;  %v1649_v44 = vld [vmem:[%s3516_s5 + $0x40] sm:$0xf]  ;;  %v2266_v45 = vld [vmem:[%s3516_s5 + $0x4c] sm:$0xf0]  ;;  %v1843_v41 = vld [vmem:[%s3516_s5 + $0x1d0] sm:$0xf0] }
  0x16   :  { %v1777_v46 = vld [vmem:[%s3516_s5 + $0x140] sm:$0xf]  ;;  %v1650_v47 = vor.u32 %v2266_v45, %v1649_v44  ;;  %v2298_v48 = vld [vmem:[%s3516_s5 + $0x14c] sm:$0xf0]  ;;  %v2344_v42 = vld [vmem:[%s3516_s5 + $0x2c4] sm:$0xf] }
  0x17   :  { %1012 = vmatpush.bf16.msrb.mxu0 %v1698_v4  ;;  %v1905_v49 = vld [vmem:[%s3516_s5 + $0x240] sm:$0xf]  ;;  %v2330_v50 = vld [vmem:[%s3516_s5 + $0x24c] sm:$0xf0]  ;;  %v1778_v52 = vor.u32 %v2298_v48, %v1777_v46  ;;  %v1971_v44 = vld [vmem:[%s3516_s5 + $0x2d0] sm:$0xf0] }
  0x18   :  { %1025 = vmatpush.bf16.msrb.mxu1 %v1826_v8  ;;  %v1906_v53 = vor.u32 %v2330_v50, %v1905_v49  ;;  %v2033_v54 = vld [vmem:[%s3516_s5 + $0x340] sm:$0xf]  ;;  %v2362_v55 = vld [vmem:[%s3516_s5 + $0x34c] sm:$0xf0]  ;;  %v2376_v45 = vld [vmem:[%s3516_s5 + $0x3c4] sm:$0xf]  ;;  %v1974_v48 = vor.u32 %v2344_v42, %v1971_v44 }
  0x19   :  { %1038 = vmatpush.bf16.msrb.mxu2 %v1954_v9  ;;  %1051 = vmatpush.bf16.msrb.mxu3 %v2082_v13  ;;  %v2034_v56 = vor.u32 %v2362_v55, %v2033_v54  ;;  %v1633_v57 = vld [vmem:[%s3516_s5 + $0x20] sm:$0xf]  ;;  %v2262_v58 = vld [vmem:[%s3516_s5 + $0x2c] sm:$0xf0]  ;;  %v2099_v46 = vld [vmem:[%s3516_s5 + $0x3d0] sm:$0xf0] }
  0x1a   :  { %v1761_v59 = vld [vmem:[%s3516_s5 + $0x120] sm:$0xf]  ;;  %v1634_v60 = vor.u32 %v2262_v58, %v1633_v57  ;;  %v2294_v61 = vld [vmem:[%s3516_s5 + $0x12c] sm:$0xf0]  ;;  %v2102_v49 = vor.u32 %v2376_v45, %v2099_v46  ;;  %v2276_v50 = vld [vmem:[%s3516_s5 + $0xa4] sm:$0xf] }
  0x1b   :  { %v1889_v62 = vld [vmem:[%s3516_s5 + $0x220] sm:$0xf]  ;;  %v2326_v63 = vld [vmem:[%s3516_s5 + $0x22c] sm:$0xf0]  ;;  %v1762_v1 = vor.u32 %v2294_v61, %v1761_v59  ;;  %v1827_v55 = vld [vmem:[%s3516_s5 + $0x1b0] sm:$0xf0] }
  0x1c   :  { %v1890_v2 = vor.u32 %v2326_v63, %v1889_v62  ;;  %v2017_v3 = vld [vmem:[%s3516_s5 + $0x320] sm:$0xf]  ;;  %v2358_v4 = vld [vmem:[%s3516_s5 + $0x32c] sm:$0xf0]  ;;  %v1955_v57 = vld [vmem:[%s3516_s5 + $0x2b0] sm:$0xf0] }
  0x1d   :  { %v2018_v5 = vor.u32 %v2358_v4, %v2017_v3  ;;  %v1617_v7 = vld [vmem:[%s3516_s5] sm:$0xf]  ;;  %v2258_v8 = vld [vmem:[%s3516_s5 + $0xc] sm:$0xf0]  ;;  %v2372_v59 = vld [vmem:[%s3516_s5 + $0x3a4] sm:$0xf] }
  0x1e   :  { %v1745_v9 = vld [vmem:[%s3516_s5 + $0x100] sm:$0xf]  ;;  %v1618_v10 = vor.u32 %v2258_v8, %v1617_v7  ;;  %v2290_v11 = vld [vmem:[%s3516_s5 + $0x10c] sm:$0xf0]  ;;  %v1811_v4 = vld [vmem:[%s3516_s5 + $0x190] sm:$0xf0] }
  0x1f   :  { %v1873_v13 = vld [vmem:[%s3516_s5 + $0x200] sm:$0xf]  ;;  %v2368_v8 = vld [vmem:[%s3516_s5 + $0x384] sm:$0xf] }
  0x20   :  { %v2260_v44 = vld [vmem:[%s3516_s5 + $0x24] sm:$0xf] }
  0x8b   :  { %v77_v16 = vpop.f32.mrf.mxu0  ;;  %v90_v17 = vpop.f32.mrf.mxu1 }
  0x8c   :  { %v2530_v18 = vadd.f32 %v77_v16, %v41_v14  ;;  %v2532_v19 = vadd.f32 %v90_v17, %v42_v15  ;;  %v1681_v14 = vld [vmem:[%s3516_s5 + $0x80] sm:$0xf]  ;;  %v2274_v15 = vld [vmem:[%s3516_s5 + $0x8c] sm:$0xf0] }
  0x8d   :  { %v1809_v16 = vld [vmem:[%s3516_s5 + $0x180] sm:$0xf]  ;;  %v1682_v17 = vor.u32 %v2274_v15, %v1681_v14  ;;  %v2322_v14 = vld [vmem:[%s3516_s5 + $0x20c] sm:$0xf0] }
  0x8e   :  { %v120_v22 = vadd.f32 %v2532_v19, %v2530_v18  ;;  %v133_v24 = vmul.f32 %v2530_v18, %v2530_v18  ;;  %v134_v25 = vmul.f32 %v2532_v19, %v2532_v19 }
  0x8f   :  { %1013 = vmatpush.bf16.msrb.mxu0 %v1682_v17  ;;  %v1874_v17 = vor.u32 %v2322_v14, %v1873_v13  ;;  %v2268_v14 = vld [vmem:[%s3516_s5 + $0x64] sm:$0xf] }
  0x90   :  { %v137_v34 = vadd.f32 %v134_v25, %v133_v24 }
  0x92   :  { %v103_v23 = vpop.f32.mrf.mxu2 }
  0x93   :  { %v2540_v26 = vadd.f32 %v103_v23, %v43_v20  ;;  %v116_v27 = vpop.f32.mrf.mxu3  ;;  %v79_v28 = vpop.f32.mrf.mxu0  ;;  %v2306_v20 = vld [vmem:[%s3516_s5 + $0x18c] sm:$0xf0]  ;;  %v126_v23 = vmul.f32 512.0, %v2622_v12 }
  0x94   :  { %v2542_v29 = vadd.f32 %v116_v27, %v44_v21  ;;  %v92_v30 = vpop.f32.mrf.mxu1  ;;  %v1937_v21 = vld [vmem:[%s3516_s5 + $0x280] sm:$0xf]  ;;  %v1810_v24 = vor.u32 %v2306_v20, %v1809_v16  ;;  %v2370_v28 = vld [vmem:[%s3516_s5 + $0x38c] sm:$0xf0]  ;;  %v1746_v16 = vor.u32 %v2290_v11, %v1745_v9  ;;  %v2067_v9 = vld [vmem:[%s3516_s5 + $0x390] sm:$0xf0] }
  0x95   :  { %v121_v31 = vadd.f32 %v120_v22, %v2540_v26  ;;  %v135_v32 = vmul.f32 %v2540_v26, %v2540_v26  ;;  %v2338_v22 = vld [vmem:[%s3516_s5 + $0x28c] sm:$0xf0]  ;;  %v2065_v27 = vld [vmem:[%s3516_s5 + $0x380] sm:$0xf] }
  0x96   :  { %v136_v37 = vmul.f32 %v2542_v29, %v2542_v29  ;;  %v1938_v25 = vor.u32 %v2338_v22, %v1937_v21  ;;  %v2066_v30 = vor.u32 %v2370_v28, %v2065_v27  ;;  %1026 = vmatpush.bf16.msrb.mxu1 %v1810_v24  ;;  %v2001_v20 = vld [vmem:[%s3516_s5 + $0x300] sm:$0xf]  ;;  %v2354_v21 = vld [vmem:[%s3516_s5 + $0x30c] sm:$0xf0]  ;;  %v2284_v22 = vld [vmem:[%s3516_s5 + $0xe4] sm:$0xf] }
  0x97   :  { %v122_v33 = vadd.f32 %v121_v31, %v2542_v29  ;;  %v138_v38 = vadd.f32 %v137_v34, %v135_v32  ;;  %v1665_v31 = vld [vmem:[%s3516_s5 + $0x60] sm:$0xf]  ;;  %v2270_v32 = vld [vmem:[%s3516_s5 + $0x6c] sm:$0xf0]  ;;  %v1859_v24 = vld [vmem:[%s3516_s5 + $0x1f0] sm:$0xf0] }
  0x98   :  { %1039 = vmatpush.bf16.msrb.mxu2 %v1938_v25  ;;  %1052 = vmatpush.bf16.msrb.mxu3 %v2066_v30  ;;  %v1666_v34 = vor.u32 %v2270_v32, %v1665_v31  ;;  %v2002_v25 = vor.u32 %v2354_v21, %v2001_v20  ;;  %v2348_v28 = vld [vmem:[%s3516_s5 + $0x2e4] sm:$0xf]  ;;  %v1987_v30 = vld [vmem:[%s3516_s5 + $0x2f0] sm:$0xf0] }
  0x99   :  { %123 = vadd.xlane.f32.xlu0 %v122_v33  ;;  %v139_v39 = vadd.f32 %v138_v38, %v136_v37  ;;  %v1793_v33 = vld [vmem:[%s3516_s5 + $0x160] sm:$0xf]  ;;  %v2334_v37 = vld [vmem:[%s3516_s5 + $0x26c] sm:$0xf0]  ;;  %v127_v38 = vsub.f32 1.0, %v126_v23 }
  0x9a   :  { %v105_v35 = vpop.f32.mrf.mxu2  ;;  %1014 = vmatpush.bf16.msrb.mxu0 %v1666_v34  ;;  %v1731_v23 = vld [vmem:[%s3516_s5 + $0xf0] sm:$0xf0]  ;;  %v2380_v31 = vld [vmem:[%s3516_s5 + $0x3e4] sm:$0xf]  ;;  %v1990_v34 = vor.u32 %v2348_v28, %v1987_v30 }
  0x9b   :  { %v118_v36 = vpop.f32.mrf.mxu3  ;;  %v2302_v35 = vld [vmem:[%s3516_s5 + $0x16c] sm:$0xf0]  ;;  %v128_v51 = vmul.f32 %v2622_v12, %v127_v38  ;;  %v1734_v27 = vor.u32 %v2284_v22, %v1731_v23  ;;  %v1795_v20 = vld [vmem:[%s3516_s5 + $0x170] sm:$0xf0]  ;;  %v2332_v21 = vld [vmem:[%s3516_s5 + $0x264] sm:$0xf] }
  0x9c   :  { %v1921_v36 = vld [vmem:[%s3516_s5 + $0x260] sm:$0xf]  ;;  %1053 = vmatpush.bf16.msrb.mxu3 %v2050_v43  ;;  %v1923_v22 = vld [vmem:[%s3516_s5 + $0x270] sm:$0xf0]  ;;  %v2364_v23 = vld [vmem:[%s3516_s5 + $0x364] sm:$0xf] }
  0x9d   :  { %v1922_v40 = vor.u32 %v2334_v37, %v1921_v36  ;;  %v129_v0 = vadd.f32 %v2622_v12, %v128_v51  ;;  %v2280_v36 = vld [vmem:[%s3516_s5 + $0xc4] sm:$0xf]  ;;  %v1715_v37 = vld [vmem:[%s3516_s5 + $0xd0] sm:$0xf0]  ;;  %v1926_v28 = vor.u32 %v2332_v21, %v1923_v22 }
  0x9e   :  { %1015 = vmatpush.bf16.msrb.mxu0 %v1650_v47  ;;  %v1699_v51 = vld [vmem:[%s3516_s5 + $0xb0] sm:$0xf0]  ;;  %v2264_v30 = vld [vmem:[%s3516_s5 + $0x44] sm:$0xf] }
  0x9f   :  { %1040 = vmatpush.bf16.msrb.mxu2 %v1922_v40  ;;  %v131_v15 = vsel %vm130_vm2, %v2622_v12, %v129_v0  ;;  %v2316_v12 = vld [vmem:[%s3516_s5 + $0x1e4] sm:$0xf]  ;;  %v1702_v58 = vor.u32 %v2276_v50, %v1699_v51 }
  0xa0   :  { %1054 = vmatpush.bf16.msrb.mxu3 %v2034_v56  ;;  %v2312_v40 = vld [vmem:[%s3516_s5 + $0x1c4] sm:$0xf] }
  0xa1   :  { %140 = vadd.xlane.f32.xlu0 %v139_v39  ;;  %v1794_v39 = vor.u32 %v2302_v35, %v1793_v33  ;;  %v1862_v33 = vor.u32 %v2316_v12, %v1859_v24  ;;  %v2115_v35 = vld [vmem:[%s3516_s5 + $0x3f0] sm:$0xf0]  ;;  %v1846_v43 = vor.u32 %v2312_v40, %v1843_v41  ;;  %v2340_v56 = vld [vmem:[%s3516_s5 + $0x2a4] sm:$0xf]  ;;  %v2879_v24 = vld [vmem:[%s3514_s3] sm:$0xf] }
  0xa2   :  { %1016 = vmatpush.bf16.msrb.mxu0 %v1634_v60  ;;  %v2118_v38 = vor.u32 %v2380_v31, %v2115_v35  ;;  %v2083_v60 = vld [vmem:[%s3516_s5 + $0x3b0] sm:$0xf0]  ;;  %v1958_v63 = vor.u32 %v2340_v56, %v1955_v57  ;;  %v2272_v0 = vld [vmem:[%s3516_s5 + $0x84] sm:$0xf]  ;;  %v166_v41 = vperm.slane %v2879_v24, 0 }
  0xa3   :  { %1027 = vmatpush.bf16.msrb.mxu1 %v1794_v39  ;;  %1041 = vmatpush.bf16.msrb.mxu2 %v1906_v53  ;;  %v1718_v39 = vor.u32 %v2280_v36, %v1715_v37  ;;  %v2086_v3 = vor.u32 %v2372_v59, %v2083_v60  ;;  %v2051_v12 = vld [vmem:[%s3516_s5 + $0x370] sm:$0xf0]  ;;  %v2328_v36 = vld [vmem:[%s3516_s5 + $0x244] sm:$0xf] }
  0xa4   :  { %1055 = vmatpush.bf16.msrb.mxu3 %v2018_v5  ;;  %v2336_v5 = vld [vmem:[%s3516_s5 + $0x284] sm:$0xf]  ;;  %v1651_v31 = vld [vmem:[%s3516_s5 + $0x50] sm:$0xf0] }
  0xa5   :  { %v1779_v35 = vld [vmem:[%s3516_s5 + $0x150] sm:$0xf0]  ;;  %v2256_v56 = vld [vmem:[%s3516_s5 + $0x4] sm:$0xf] }
  0xa6   :  { %1017 = vmatpush.bf16.msrb.mxu0 %v1618_v10  ;;  %v1907_v37 = vld [vmem:[%s3516_s5 + $0x250] sm:$0xf0] }
  0xa7   :  { %1028 = vmatpush.bf16.msrb.mxu1 %v1778_v52  ;;  %1042 = vmatpush.bf16.msrb.mxu2 %v1890_v2  ;;  %v2308_v52 = vld [vmem:[%s3516_s5 + $0x1a4] sm:$0xf]  ;;  %v2035_v40 = vld [vmem:[%s3516_s5 + $0x350] sm:$0xf0]  ;;  %v1910_v46 = vor.u32 %v2328_v36, %v1907_v37 }
  0xa8   :  { %1056 = vmatpush.bf16.msrb.mxu3 %v2002_v25  ;;  %v1830_v62 = vor.u32 %v2308_v52, %v1827_v55  ;;  %v2304_v2 = vld [vmem:[%s3516_s5 + $0x184] sm:$0xf]  ;;  %v2019_v55 = vld [vmem:[%s3516_s5 + $0x330] sm:$0xf0] }
  0xa9   :  { %v1814_v11 = vor.u32 %v2304_v2, %v1811_v4  ;;  %v2324_v52 = vld [vmem:[%s3516_s5 + $0x224] sm:$0xf]  ;;  %v1619_v57 = vld [vmem:[%s3516_s5 + $0x10] sm:$0xf0]  ;;  %v168_v4 = vperm.slane %v2879_v24, 2 }
  0xaa   :  { %1062 = vmatpush.bf16.msra.mxu0 %v1734_v27  ;;  %v1875_v2 = vld [vmem:[%s3516_s5 + $0x210] sm:$0xf0] }
  0xab   :  { %1029 = vmatpush.bf16.msrb.mxu1 %v1762_v1  ;;  %1043 = vmatpush.bf16.msrb.mxu2 %v1874_v17  ;;  %v1683_v1 = vld [vmem:[%s3516_s5 + $0x90] sm:$0xf0]  ;;  %v2070_v17 = vor.u32 %v2368_v8, %v2067_v9  ;;  %v178_v9 = vld [vmem:[%s3515_s4] sm:$0xf] }
  0xac   :  { %1101 = vmatpush.bf16.msra.mxu3 %v2118_v38  ;;  %v1686_v10 = vor.u32 %v2272_v0, %v1683_v1  ;;  %v2320_v1 = vld [vmem:[%s3516_s5 + $0x204] sm:$0xf]  ;;  %v2003_v8 = vld [vmem:[%s3516_s5 + $0x310] sm:$0xf0] }
  0xae   :  { %1063 = vmatpush.bf16.msra.mxu0 %v1718_v39  ;;  %v2360_v39 = vld [vmem:[%s3516_s5 + $0x344] sm:$0xf] }
  0xaf   :  { %1030 = vmatpush.bf16.msrb.mxu1 %v1746_v16  ;;  %1088 = vmatpush.bf16.msra.mxu2 %v1990_v34  ;;  %v2300_v16 = vld [vmem:[%s3516_s5 + $0x164] sm:$0xf]  ;;  %v2054_v34 = vor.u32 %v2364_v23, %v2051_v12  ;;  %v2038_v51 = vor.u32 %v2360_v39, %v2035_v40  ;;  %v182_v23 = vperm.slane %v178_v9, 2  ;;  %v183_v12 = vperm.slane %v178_v9, 3 }
  0xb0   :  { %1102 = vmatpush.bf16.msra.mxu3 %v2102_v49  ;;  %v1798_v27 = vor.u32 %v2300_v16, %v1795_v20  ;;  %v1763_v49 = vld [vmem:[%s3516_s5 + $0x130] sm:$0xf0]  ;;  %v1878_v20 = vor.u32 %v2320_v1, %v1875_v2  ;;  %v2287_v1 = vld [vmem:[%s3516_s5 + $0xf4] sm:$0xf0] }
  0xb2   :  { %1064 = vmatpush.bf16.msra.mxu0 %v1702_v58  ;;  %v167_v58 = vperm.slane %v2879_v24, 1 }
  0xb3   :  { %1075 = vmatpush.bf16.msra.mxu1 %v1862_v33  ;;  %1089 = vmatpush.bf16.msra.mxu2 %v1974_v48  ;;  %v2296_v33 = vld [vmem:[%s3516_s5 + $0x144] sm:$0xf] }
  0xb4   :  { %1103 = vmatpush.bf16.msra.mxu3 %v2086_v3  ;;  %v1782_v45 = vor.u32 %v2296_v33, %v1779_v35  ;;  %v2292_v48 = vld [vmem:[%s3516_s5 + $0x124] sm:$0xf] }
  0xb5   :  { %v2352_v3 = vld [vmem:[%s3516_s5 + $0x304] sm:$0xf] }
  0xb6   :  { %1065 = vmatpush.bf16.msra.mxu0 %v1686_v10  ;;  %v2006_v21 = vor.u32 %v2352_v3, %v2003_v8 }
  0xb7   :  { %1076 = vmatpush.bf16.msra.mxu1 %v1846_v43  ;;  %1090 = vmatpush.bf16.msra.mxu2 %v1958_v63  ;;  %v1654_v43 = vor.u32 %v2264_v30, %v1651_v31  ;;  %v1766_v63 = vor.u32 %v2292_v48, %v1763_v49 }
  0xb8   :  { %1104 = vmatpush.bf16.msra.mxu3 %v2070_v17  ;;  %v1622_v17 = vor.u32 %v2256_v56, %v1619_v57 }
  0xbb   :  { %1077 = vmatpush.bf16.msra.mxu1 %v1830_v62  ;;  %v1747_v62 = vld [vmem:[%s3516_s5 + $0x110] sm:$0xf0] }
  0xbc   :  { %1105 = vmatpush.bf16.msra.mxu3 %v2054_v34 }
  0xbf   :  { %1078 = vmatpush.bf16.msra.mxu1 %v1814_v11 }
  0xc0   :  { %1106 = vmatpush.bf16.msra.mxu3 %v2038_v51 }
  0xc3   :  { %1079 = vmatpush.bf16.msra.mxu1 %v1798_v27 }
  0xc7   :  { %1080 = vmatpush.bf16.msra.mxu1 %v1782_v45 }
  0xcb   :  { %1081 = vmatpush.bf16.msra.mxu1 %v1766_v63 }
 0x10c   :  { %v124_v6 = vpop.xlane.xlu0 %123 }
 0x10d   :  { %v2770_v32 = vmul.f32 %v131_v15, %v124_v6  ;;  %v1939_v6 = vld [vmem:[%s3516_s5 + $0x290] sm:$0xf0] }
 0x10e   :  { %v1942_v13 = vor.u32 %v2336_v5, %v1939_v6 }
 0x10f   :  { %v143_v53 = vmul.f32 %v2770_v32, %v2770_v32  ;;  %v145_v10 = vsub.f32 %v2530_v18, %v2770_v32  ;;  %v146_v11 = vsub.f32 %v2532_v19, %v2770_v32  ;;  %v180_v19 = vperm.slane %v178_v9, 0 }
 0x110   :  { %1091 = vmatpush.bf16.msra.mxu2 %v1942_v13  ;;  %v147_v13 = vsub.f32 %v2540_v26, %v2770_v32  ;;  %v181_v26 = vperm.slane %v178_v9, 1  ;;  %v1993_v9 = vld [vmem:[%s3516_s5 + $0x2e8] sm:$0xf] }
 0x114   :  { %v141_v47 = vpop.xlane.xlu0 %140  ;;  %1092 = vmatpush.bf16.msra.mxu2 %v1926_v28 }
 0x115   :  { %v142_v54 = vmul.f32 %v141_v47, %v131_v15  ;;  %v1667_v15 = vld [vmem:[%s3516_s5 + $0x70] sm:$0xf0] }
 0x116   :  { %v1670_v25 = vor.u32 %v2268_v14, %v1667_v15  ;;  %v1635_v47 = vld [vmem:[%s3516_s5 + $0x30] sm:$0xf0]  ;;  %v169_v14 = vperm.slane %v2879_v24, 3  ;;  %v148_v15 = vsub.f32 %v2542_v29, %v2770_v32 }
 0x117   :  { %v144_v61 = vsub.f32 %v142_v54, %v143_v53  ;;  %v1891_v53 = vld [vmem:[%s3516_s5 + $0x230] sm:$0xf0]  ;;  %v2356_v54 = vld [vmem:[%s3516_s5 + $0x324] sm:$0xf]  ;;  %v1638_v60 = vor.u32 %v2260_v44, %v1635_v47 }
 0x118   :  { %1066 = vmatpush.bf16.msra.mxu0 %v1670_v25  ;;  %1093 = vmatpush.bf16.msra.mxu2 %v1910_v46  ;;  %v1894_v0 = vor.u32 %v2324_v52, %v1891_v53  ;;  %v2022_v6 = vor.u32 %v2356_v54, %v2019_v55 }
 0x119   :  { %v2843_v7 = vadd.f32 1e-05, %v144_v61  ;;  %v2288_v61 = vld [vmem:[%s3516_s5 + $0x104] sm:$0xf] }
 0x11a   :  { %v1750_v18 = vor.u32 %v2288_v61, %v1747_v62  ;;  %1107 = vmatpush.bf16.msra.mxu3 %v2022_v6 }
 0x11b   :  { %2421 = vrsqrt.f32 %v2843_v7  ;;  %vm156_vm4 = vweird.f32 %v2843_v7 }
 0x11c   :  { %1067 = vmatpush.bf16.msra.mxu0 %v1654_v43  ;;  %1094 = vmatpush.bf16.msra.mxu2 %v1894_v0  ;;  %v1737_v0 = vld [vmem:[%s3516_s5 + $0xe8] sm:$0xf] }
 0x11d   :  { %1082 = vmatpush.bf16.msra.mxu1 %v1750_v18 }
 0x11e   :  { %1108 = vmatpush.bf16.msra.mxu3 %v2006_v21  ;;  %v1721_v21 = vld [vmem:[%s3516_s5 + $0xc8] sm:$0xf] }
 0x120   :  { %1068 = vmatpush.bf16.msra.mxu0 %v1638_v60  ;;  %1095 = vmatpush.bf16.msra.mxu2 %v1878_v20 }
 0x121   :  { %v2422_v38 = vpop.eup %2421 }
 0x122   :  { %v151_v42 = vmul.f32 %v2422_v38, %v2843_v7  ;;  %vm157_vm3 = vweird.f32 %v2422_v38 }
 0x123   :  { %vm158_vm5 = vmor %vm156_vm4, %vm157_vm3 }
 0x124   :  { %v152_v50 = vmul.f32 %v2422_v38, %v151_v42  ;;  %1069 = vmatpush.bf16.msra.mxu0 %v1622_v17 }
 0x126   :  { %v153_v59 = vmul.f32 0.5, %v152_v50 }
 0x128   :  { %v154_v5 = vsub.f32 1.5, %v153_v59 }
 0x12a   :  { %v155_v16 = vmul.f32 %v2422_v38, %v154_v5  ;;  %v2319_v5 = vld [vmem:[%s3516_s5 + $0x1f4] sm:$0xf0] }
 0x12c   :  { %v159_v22 = vsel %vm158_vm5, %v2422_v38, %v155_v16  ;;  %v2383_v16 = vld [vmem:[%s3516_s5 + $0x3f4] sm:$0xf0] }
 0x12d   :  { %v160_v25 = vmul.f32 %v159_v22, %v145_v10  ;;  %v161_v27 = vmul.f32 %v159_v22, %v146_v11  ;;  %v162_v29 = vmul.f32 %v159_v22, %v147_v13  ;;  %v163_v32 = vmul.f32 %v159_v22, %v148_v15  ;;  %v2351_v10 = vld [vmem:[%s3516_s5 + $0x2f4] sm:$0xf0]  ;;  %v2121_v15 = vld [vmem:[%s3516_s5 + $0x3e8] sm:$0xf] }
 0x12f   :  { %v174_v7 = vmul.f32 %v166_v41, %v160_v25  ;;  %v175_v28 = vmul.f32 %v167_v58, %v161_v27  ;;  %v176_v30 = vmul.f32 %v168_v4, %v162_v29  ;;  %v177_v31 = vmul.f32 %v169_v14, %v163_v32  ;;  %v1865_v4 = vld [vmem:[%s3516_s5 + $0x1e8] sm:$0xf]  ;;  %v2315_v25 = vld [vmem:[%s3516_s5 + $0x1d4] sm:$0xf0] }
 0x130   :  { %v1738_v14 = vor.u32 %v2287_v1, %v1737_v0  ;;  %v1866_v20 = vor.u32 %v2319_v5, %v1865_v4  ;;  %v2122_v29 = vor.u32 %v2383_v16, %v2121_v15  ;;  %v1977_v32 = vld [vmem:[%s3516_s5 + $0x2c8] sm:$0xf]  ;;  %v2335_v1 = vld [vmem:[%s3516_s5 + $0x274] sm:$0xf0] }
 0x131   :  { %v188_v33 = vadd.f32 %v180_v19, %v174_v7  ;;  %v189_v34 = vadd.f32 %v181_v26, %v175_v28  ;;  %v190_v35 = vadd.f32 %v182_v23, %v176_v30  ;;  %v191_v36 = vadd.f32 %v183_v12, %v177_v31  ;;  %v2283_v19 = vld [vmem:[%s3516_s5 + $0xd4] sm:$0xf0]  ;;  %v1849_v12 = vld [vmem:[%s3516_s5 + $0x1c8] sm:$0xf] }
 0x132   :  { %v1994_v23 = vor.u32 %v2351_v10, %v1993_v9  ;;  %v2347_v7 = vld [vmem:[%s3516_s5 + $0x2d4] sm:$0xf0]  ;;  %v1722_v30 = vor.u32 %v2283_v19, %v1721_v21  ;;  %v2105_v31 = vld [vmem:[%s3516_s5 + $0x3c8] sm:$0xf] }
 0x133   :  { %v192_v37 = vmul.f32 %v188_v33, %v188_v33  ;;  %v193_v38 = vmul.f32 %v189_v34, %v189_v34  ;;  %v194_v39 = vmul.f32 %v190_v35, %v190_v35  ;;  %v195_v40 = vmul.f32 %v191_v36, %v191_v36  ;;  %v1929_v0 = vld [vmem:[%s3516_s5 + $0x268] sm:$0xf]  ;;  %v2367_v4 = vld [vmem:[%s3516_s5 + $0x374] sm:$0xf0] }
 0x134   :  { %v2267_v9 = vld [vmem:[%s3516_s5 + $0x54] sm:$0xf0]  ;;  %v1930_v10 = vor.u32 %v2335_v1, %v1929_v0  ;;  %v1913_v16 = vld [vmem:[%s3516_s5 + $0x248] sm:$0xf]  ;;  %v1723_v0 = vld [vmem:[%s3516_s5 + $0xd8] sm:$0xf0] }
 0x135   :  { %v196_v42 = vmul.f32 %v192_v37, %v188_v33  ;;  %v197_v43 = vmul.f32 %v193_v38, %v189_v34  ;;  %v198_v44 = vmul.f32 %v194_v39, %v190_v35  ;;  %v199_v45 = vmul.f32 %v195_v40, %v191_v36  ;;  %v1833_v38 = vld [vmem:[%s3516_s5 + $0x1a8] sm:$0xf]  ;;  %v2311_v39 = vld [vmem:[%s3516_s5 + $0x1b4] sm:$0xf0]  ;;  %v2313_v1 = vld [vmem:[%s3516_s5 + $0x1cc] sm:$0xf] }
 0x136   :  { %v1978_v37 = vor.u32 %v2347_v7, %v1977_v32  ;;  %v2041_v19 = vld [vmem:[%s3516_s5 + $0x348] sm:$0xf] }
 0x137   :  { %v200_v24 = vmul.f32 0.044715, %v196_v42  ;;  %v201_v41 = vmul.f32 0.044715, %v197_v43  ;;  %v202_v46 = vmul.f32 0.044715, %v198_v44 }
 0x138   :  { %v203_v47 = vmul.f32 0.044715, %v199_v45  ;;  %v1961_v42 = vld [vmem:[%s3516_s5 + $0x2a8] sm:$0xf]  ;;  %v2343_v43 = vld [vmem:[%s3516_s5 + $0x2b4] sm:$0xf0] }
 0x139   :  { %v204_v48 = vadd.f32 %v200_v24, %v188_v33  ;;  %v205_v49 = vadd.f32 %v201_v41, %v189_v34  ;;  %v206_v50 = vadd.f32 %v202_v46, %v190_v35  ;;  %v2089_v45 = vld [vmem:[%s3516_s5 + $0x3a8] sm:$0xf]  ;;  %v2375_v24 = vld [vmem:[%s3516_s5 + $0x3b4] sm:$0xf0]  ;;  %v1834_v41 = vor.u32 %v2311_v39, %v1833_v38 }
 0x13a   :  { %v207_v51 = vadd.f32 %v203_v47, %v191_v36  ;;  %v1689_v46 = vld [vmem:[%s3516_s5 + $0x88] sm:$0xf]  ;;  %v2275_v47 = vld [vmem:[%s3516_s5 + $0x94] sm:$0xf0] }
 0x13b   :  { %v208_v52 = vmul.f32 0.7978846, %v204_v48  ;;  %v209_v53 = vmul.f32 0.7978846, %v205_v49  ;;  %v210_v54 = vmul.f32 0.7978846, %v206_v50  ;;  %v1962_v48 = vor.u32 %v2343_v43, %v1961_v42 }
 0x13c   :  { %v211_v55 = vmul.f32 0.7978846, %v207_v51  ;;  %v1817_v49 = vld [vmem:[%s3516_s5 + $0x188] sm:$0xf]  ;;  %v2307_v50 = vld [vmem:[%s3516_s5 + $0x194] sm:$0xf0]  ;;  %v2090_v51 = vor.u32 %v2375_v24, %v2089_v45 }
 0x13d   :  { %2423 = vtanh.f32 %v208_v52  ;;  %v1945_v52 = vld [vmem:[%s3516_s5 + $0x288] sm:$0xf]  ;;  %v2259_v39 = vld [vmem:[%s3516_s5 + $0x14] sm:$0xf0] }
 0x13e   :  { %2425 = vtanh.f32 %v209_v53  ;;  %v2339_v53 = vld [vmem:[%s3516_s5 + $0x294] sm:$0xf0]  ;;  %v1769_v7 = vld [vmem:[%s3516_s5 + $0x128] sm:$0xf] }
 0x13f   :  { %2427 = vtanh.f32 %v210_v54  ;;  %v1690_v54 = vor.u32 %v2275_v47, %v1689_v46  ;;  %v1625_v38 = vld [vmem:[%s3516_s5 + $0x8] sm:$0xf]  ;;  %v2291_v43 = vld [vmem:[%s3516_s5 + $0x114] sm:$0xf0]  ;;  %v1739_v46 = vld [vmem:[%s3516_s5 + $0xf8] sm:$0xf0] }
 0x140   :  { %2429 = vtanh.f32 %v211_v55  ;;  %v2073_v55 = vld [vmem:[%s3516_s5 + $0x388] sm:$0xf]  ;;  %v2323_v24 = vld [vmem:[%s3516_s5 + $0x214] sm:$0xf0] }
 0x141   :  { %v1753_v42 = vld [vmem:[%s3516_s5 + $0x108] sm:$0xf] }
 0x143   :  { %v2424_v56 = vpop.eup %2423 }
 0x144   :  { %v2426_v57 = vpop.eup %2425  ;;  %v216_v58 = vadd.f32 1.0, %v2424_v56  ;;  %v2371_v56 = vld [vmem:[%s3516_s5 + $0x394] sm:$0xf0] }
 0x145   :  { %v2428_v59 = vpop.eup %2427  ;;  %v217_v60 = vadd.f32 1.0, %v2426_v57  ;;  %v1818_v57 = vor.u32 %v2307_v50, %v1817_v49  ;;  %v2317_v49 = vld [vmem:[%s3516_s5 + $0x1ec] sm:$0xf]  ;;  %v1867_v50 = vld [vmem:[%s3516_s5 + $0x1f8] sm:$0xf0] }
 0x146   :  { %v2430_v61 = vpop.eup %2429  ;;  %v220_v62 = vmul.f32 0.5, %v216_v58  ;;  %v218_v63 = vadd.f32 1.0, %v2428_v59  ;;  %v1673_v58 = vld [vmem:[%s3516_s5 + $0x68] sm:$0xf]  ;;  %v2271_v59 = vld [vmem:[%s3516_s5 + $0x74] sm:$0xf0] }
 0x147   :  { %v221_v2 = vmul.f32 0.5, %v217_v60  ;;  %v219_v3 = vadd.f32 1.0, %v2430_v61  ;;  %v1946_v60 = vor.u32 %v2339_v53, %v1945_v52  ;;  %v1801_v61 = vld [vmem:[%s3516_s5 + $0x168] sm:$0xf]  ;;  %v2355_v52 = vld [vmem:[%s3516_s5 + $0x314] sm:$0xf0] }
 0x148   :  { %v2984_v6 = vmul.f32 %v220_v62, %v188_v33  ;;  %v222_v8 = vmul.f32 0.5, %v218_v63  ;;  %v2379_v33 = vld [vmem:[%s3516_s5 + $0x3d4] sm:$0xf0]  ;;  %v2074_v63 = vor.u32 %v2371_v56, %v2073_v55  ;;  %v2349_v53 = vld [vmem:[%s3516_s5 + $0x2ec] sm:$0xf]  ;;  %v1754_v55 = vor.u32 %v2291_v43, %v1753_v42 }
 0x149   :  { %v2992_v11 = vmul.f32 %v221_v2, %v189_v34  ;;  %v223_v13 = vmul.f32 0.5, %v219_v3  ;;  %v1850_v34 = vor.u32 %v2315_v25, %v1849_v12  ;;  %v2106_v40 = vor.u32 %v2379_v33, %v2105_v31  ;;  %v2303_v62 = vld [vmem:[%s3516_s5 + $0x174] sm:$0xf0]  ;;  %v2057_v3 = vld [vmem:[%s3516_s5 + $0x368] sm:$0xf] }
 0x14a   :  { %v3002_v17 = vpack.c.bf16 %v2984_v6, %v2984_v6  ;;  %v3004_v18 = vmul.f32 %v222_v8, %v190_v35  ;;  %v1705_v35 = vld [vmem:[%s3516_s5 + $0xa8] sm:$0xf]  ;;  %v1674_v2 = vor.u32 %v2271_v59, %v1673_v58  ;;  %v1802_v5 = vor.u32 %v2303_v62, %v1801_v61  ;;  %v2123_v58 = vld [vmem:[%s3516_s5 + $0x3f8] sm:$0xf0] }
 0x14b   :  { %v3014_v22 = vpack.c.bf16 %v2992_v11, %v2992_v11  ;;  %v3016_v26 = vmul.f32 %v223_v13, %v191_v36  ;;  %v2279_v36 = vld [vmem:[%s3516_s5 + $0xb4] sm:$0xf0]  ;;  %v1657_v8 = vld [vmem:[%s3516_s5 + $0x48] sm:$0xf]  ;;  %v2058_v15 = vor.u32 %v2367_v4, %v2057_v3  ;;  %v1851_v3 = vld [vmem:[%s3516_s5 + $0x1d8] sm:$0xf0] }
 0x14c   :  { %1018 = vmatmul.bf16.vlgmr.msrb.gmra.mxu0 %v3002_v17  ;;  %v3027_v27 = vpack.c.bf16 %v3004_v18, %v3004_v18  ;;  %v1706_v44 = vor.u32 %v2279_v36, %v1705_v35  ;;  %v1785_v13 = vld [vmem:[%s3516_s5 + $0x148] sm:$0xf]  ;;  %v1658_v21 = vor.u32 %v2267_v9, %v1657_v8  ;;  %v2345_v4 = vld [vmem:[%s3516_s5 + $0x2cc] sm:$0xf]  ;;  %v2107_v9 = vld [vmem:[%s3516_s5 + $0x3d8] sm:$0xf0] }
 0x14d   :  { %1031 = vmatmul.bf16.vlgmr.msrb.gmra.mxu1 %v3014_v22  ;;  %v3038_v28 = vpack.c.bf16 %v3016_v26, %v3016_v26  ;;  %1114 = vmatpush.bf16.msrb.mxu0 %v1738_v14  ;;  %v2299_v14 = vld [vmem:[%s3516_s5 + $0x154] sm:$0xf0]  ;;  %v1641_v25 = vld [vmem:[%s3516_s5 + $0x28] sm:$0xf]  ;;  %v2377_v8 = vld [vmem:[%s3516_s5 + $0x3cc] sm:$0xf] }
 0x14e   :  { %1044 = vmatmul.bf16.vlgmr.msrb.gmra.mxu2 %v3027_v27  ;;  %1127 = vmatpush.bf16.msrb.mxu1 %v1866_v20  ;;  %v2331_v20 = vld [vmem:[%s3516_s5 + $0x254] sm:$0xf0]  ;;  %v1786_v12 = vor.u32 %v2299_v14, %v1785_v13  ;;  %v1897_v33 = vld [vmem:[%s3516_s5 + $0x228] sm:$0xf]  ;;  %v1854_v13 = vor.u32 %v2313_v1, %v1851_v3  ;;  %v2261_v3 = vld [vmem:[%s3516_s5 + $0x2c] sm:$0xf] }
 0x14f   :  { %1057 = vmatmul.bf16.vlgmr.msrb.gmra.mxu3 %v3038_v28  ;;  %1140 = vmatpush.bf16.msrb.mxu2 %v1994_v23  ;;  %v2363_v23 = vld [vmem:[%s3516_s5 + $0x354] sm:$0xf0]  ;;  %v1914_v32 = vor.u32 %v2331_v20, %v1913_v16  ;;  %v2025_v35 = vld [vmem:[%s3516_s5 + $0x328] sm:$0xf]  ;;  %v1707_v16 = vld [vmem:[%s3516_s5 + $0xb8] sm:$0xf0] }
 0x150   :  { %1153 = vmatpush.bf16.msrb.mxu3 %v2122_v29  ;;  %v2263_v29 = vld [vmem:[%s3516_s5 + $0x34] sm:$0xf0]  ;;  %v2042_v31 = vor.u32 %v2363_v23, %v2041_v19  ;;  %v2309_v20 = vld [vmem:[%s3516_s5 + $0x1ac] sm:$0xf]  ;;  %v1835_v19 = vld [vmem:[%s3516_s5 + $0x1b8] sm:$0xf0] }
 0x151   :  { %1115 = vmatpush.bf16.msrb.mxu0 %v1722_v30  ;;  %v2295_v30 = vld [vmem:[%s3516_s5 + $0x134] sm:$0xf0]  ;;  %v1642_v36 = vor.u32 %v2263_v29, %v1641_v25  ;;  %v2341_v23 = vld [vmem:[%s3516_s5 + $0x2ac] sm:$0xf]  ;;  %v2091_v29 = vld [vmem:[%s3516_s5 + $0x3b8] sm:$0xf0] }
 0x152   :  { %1128 = vmatpush.bf16.msrb.mxu1 %v1850_v34  ;;  %v2327_v34 = vld [vmem:[%s3516_s5 + $0x234] sm:$0xf0]  ;;  %v2373_v25 = vld [vmem:[%s3516_s5 + $0x3ac] sm:$0xf] }
 0x153   :  { %1141 = vmatpush.bf16.msrb.mxu2 %v1978_v37  ;;  %v2359_v37 = vld [vmem:[%s3516_s5 + $0x334] sm:$0xf0]  ;;  %v1898_v45 = vor.u32 %v2327_v34, %v1897_v33  ;;  %v1691_v33 = vld [vmem:[%s3516_s5 + $0x98] sm:$0xf0]  ;;  %v2305_v34 = vld [vmem:[%s3516_s5 + $0x18c] sm:$0xf] }
 0x154   :  { %1154 = vmatpush.bf16.msrb.mxu3 %v2106_v40  ;;  %v1770_v40 = vor.u32 %v2295_v30, %v1769_v7  ;;  %v2026_v47 = vor.u32 %v2359_v37, %v2025_v35  ;;  %v1838_v7 = vor.u32 %v2309_v20, %v1835_v19  ;;  %v2094_v35 = vor.u32 %v2373_v25, %v2091_v29  ;;  %v2337_v37 = vld [vmem:[%s3516_s5 + $0x28c] sm:$0xf]  ;;  %v1755_v29 = vld [vmem:[%s3516_s5 + $0x118] sm:$0xf0] }
 0x155   :  { %1116 = vmatpush.bf16.msrb.mxu0 %v1706_v44  ;;  %v1881_v44 = vld [vmem:[%s3516_s5 + $0x208] sm:$0xf]  ;;  %v2257_v19 = vld [vmem:[%s3516_s5 + $0xc] sm:$0xf] }
 0x156   :  { %1129 = vmatpush.bf16.msrb.mxu1 %v1834_v41  ;;  %v2285_v41 = vld [vmem:[%s3516_s5 + $0xec] sm:$0xf]  ;;  %v1882_v59 = vor.u32 %v2323_v24, %v1881_v44  ;;  %v1675_v24 = vld [vmem:[%s3516_s5 + $0x78] sm:$0xf0] }
 0x157   :  { %1142 = vmatpush.bf16.msrb.mxu2 %v1962_v48  ;;  %v2009_v48 = vld [vmem:[%s3516_s5 + $0x308] sm:$0xf]  ;;  %v1742_v56 = vor.u32 %v2285_v41, %v1739_v46  ;;  %v2301_v41 = vld [vmem:[%s3516_s5 + $0x16c] sm:$0xf] }
 0x158   :  { %1155 = vmatpush.bf16.msrb.mxu3 %v2090_v51  ;;  %v1626_v51 = vor.u32 %v2259_v39, %v1625_v38  ;;  %v2010_v61 = vor.u32 %v2355_v52, %v2009_v48  ;;  %v1947_v38 = vld [vmem:[%s3516_s5 + $0x298] sm:$0xf0]  ;;  %v2369_v39 = vld [vmem:[%s3516_s5 + $0x38c] sm:$0xf] }
 0x159   :  { %1117 = vmatpush.bf16.msrb.mxu0 %v1690_v54  ;;  %v1995_v54 = vld [vmem:[%s3516_s5 + $0x2f8] sm:$0xf0]  ;;  %v1950_v44 = vor.u32 %v2337_v37, %v1947_v38  ;;  %v2333_v48 = vld [vmem:[%s3516_s5 + $0x26c] sm:$0xf]  ;;  %v2390_v38 = vld [vmem:[%s3518_s7 + $0x30] sm:$0xff] }
 0x15a   :  { %1130 = vmatpush.bf16.msrb.mxu1 %v1818_v57  ;;  %v2381_v57 = vld [vmem:[%s3516_s5 + $0x3ec] sm:$0xf]  ;;  %v1998_v62 = vor.u32 %v2349_v53, %v1995_v54  ;;  %v2391_v37 = vld [vmem:[%s3518_s7 + $0x38] sm:$0xff] }
 0x15b   :  { %1143 = vmatpush.bf16.msrb.mxu2 %v1946_v60  ;;  %v1870_v60 = vor.u32 %v2317_v49, %v1867_v50  ;;  %v1931_v49 = vld [vmem:[%s3516_s5 + $0x278] sm:$0xf0]  ;;  %v2365_v50 = vld [vmem:[%s3516_s5 + $0x36c] sm:$0xf] }
 0x15c   :  { %1156 = vmatpush.bf16.msrb.mxu3 %v2074_v63  ;;  %1070 = vmatmul.bf16.vlgmr.msra.gmra.mxu0 %v3002_v17  ;;  %v2281_v63 = vld [vmem:[%s3516_s5 + $0xcc] sm:$0xf]  ;;  %v1934_v54 = vor.u32 %v2333_v48, %v1931_v49  ;;  %v2396_v48 = vld [vmem:[%s3518_s7 + $0x60] sm:$0xff] }
 0x15d   :  { %1083 = vmatmul.bf16.vlgmr.msra.gmra.mxu1 %v3014_v22  ;;  %1118 = vmatpush.bf16.msrb.mxu0 %v1674_v2  ;;  %v2126_v2 = vor.u32 %v2381_v57, %v2123_v58  ;;  %v2297_v57 = vld [vmem:[%s3516_s5 + $0x14c] sm:$0xf] }
 0x15e   :  { %1096 = vmatmul.bf16.vlgmr.msra.gmra.mxu2 %v3027_v27  ;;  %1131 = vmatpush.bf16.msrb.mxu1 %v1802_v5  ;;  %v1979_v5 = vld [vmem:[%s3516_s5 + $0x2d8] sm:$0xf0] }
 0x15f   :  { %1109 = vmatmul.bf16.vlgmr.msra.gmra.mxu3 %v3038_v28  ;;  %1144 = vmatpush.bf16.msrb.mxu2 %v1930_v10  ;;  %v1726_v10 = vor.u32 %v2281_v63, %v1723_v0  ;;  %v1982_v14 = vor.u32 %v2345_v4, %v1979_v5  ;;  %v2043_v63 = vld [vmem:[%s3516_s5 + $0x358] sm:$0xf0]  ;;  %v2293_v5 = vld [vmem:[%s3516_s5 + $0x12c] sm:$0xf] }
 0x160   :  { %1157 = vmatpush.bf16.msrb.mxu3 %v2058_v15  ;;  %v2277_v15 = vld [vmem:[%s3516_s5 + $0xac] sm:$0xf]  ;;  %v1643_v4 = vld [vmem:[%s3516_s5 + $0x38] sm:$0xf0] }
 0x161   :  { %1119 = vmatpush.bf16.msrb.mxu0 %v1658_v21  ;;  %v2110_v21 = vor.u32 %v2377_v8, %v2107_v9  ;;  %v1771_v9 = vld [vmem:[%s3516_s5 + $0x138] sm:$0xf0] }
 0x162   :  { %1132 = vmatpush.bf16.msrb.mxu1 %v1786_v12  ;;  %v1963_v12 = vld [vmem:[%s3516_s5 + $0x2b8] sm:$0xf0]  ;;  %v1774_v20 = vor.u32 %v2293_v5, %v1771_v9  ;;  %v2405_v5 = vld [vmem:[%s3518_s7 + $0xa8] sm:$0xff] }
 0x163   :  { %1145 = vmatpush.bf16.msrb.mxu2 %v1914_v32  ;;  %v1710_v32 = vor.u32 %v2277_v15, %v1707_v16  ;;  %v1966_v30 = vor.u32 %v2341_v23, %v1963_v12  ;;  %v2027_v15 = vld [vmem:[%s3516_s5 + $0x338] sm:$0xf0]  ;;  %v1646_v16 = vor.u32 %v2261_v3, %v1643_v4  ;;  %v2289_v12 = vld [vmem:[%s3516_s5 + $0x10c] sm:$0xf] }
 0x164   :  { %1158 = vmatpush.bf16.msrb.mxu3 %v2042_v31  ;;  %v2273_v31 = vld [vmem:[%s3516_s5 + $0x8c] sm:$0xf]  ;;  %v1627_v23 = vld [vmem:[%s3516_s5 + $0x18] sm:$0xf0] }
 0x165   :  { %1120 = vmatpush.bf16.msrb.mxu0 %v1642_v36  ;;  %v1819_v36 = vld [vmem:[%s3516_s5 + $0x198] sm:$0xf0]  ;;  %v1694_v42 = vor.u32 %v2273_v31, %v1691_v33  ;;  %v1630_v33 = vor.u32 %v2257_v19, %v1627_v23  ;;  %v2393_v4 = vld [vmem:[%s3518_s7 + $0x48] sm:$0xff] }
 0x166   :  { %1133 = vmatpush.bf16.msrb.mxu1 %v1770_v40  ;;  %v2075_v40 = vld [vmem:[%s3516_s5 + $0x398] sm:$0xf0]  ;;  %v1822_v43 = vor.u32 %v2305_v34, %v1819_v36  ;;  %v1758_v34 = vor.u32 %v2289_v12, %v1755_v29 }
 0x167   :  { %1146 = vmatpush.bf16.msrb.mxu2 %v1898_v45  ;;  %v2269_v45 = vld [vmem:[%s3516_s5 + $0x6c] sm:$0xf]  ;;  %v2078_v46 = vor.u32 %v2369_v39, %v2075_v40  ;;  %v2011_v31 = vld [vmem:[%s3516_s5 + $0x318] sm:$0xf0]  ;;  %v3417_v39 = vld [vmem:[%s3517_s6] sm:$0xf] }
 0x168   :  { %1159 = vmatpush.bf16.msrb.mxu3 %v2026_v47  ;;  %v1803_v47 = vld [vmem:[%s3516_s5 + $0x178] sm:$0xf0]  ;;  %v1678_v52 = vor.u32 %v2269_v45, %v1675_v24  ;;  %v2386_v40 = vld [vmem:[%s3518_s7 + $0x10] sm:$0xff]  ;;  %v2385_v24 = vld [vmem:[%s3518_s7 + $0x8] sm:$0xff] }
 0x169   :  { %1121 = vmatpush.bf16.msrb.mxu0 %v1626_v51  ;;  %v2059_v51 = vld [vmem:[%s3516_s5 + $0x378] sm:$0xf0]  ;;  %v1806_v53 = vor.u32 %v2301_v41, %v1803_v47  ;;  %v2397_v41 = vld [vmem:[%s3518_s7 + $0x68] sm:$0xff]  ;;  %v2384_v47 = vld [vmem:[%s3518_s7] sm:$0xff] }
 0x16a   :  { %1134 = vmatpush.bf16.msrb.mxu1 %v1754_v55  ;;  %v2265_v55 = vld [vmem:[%s3516_s5 + $0x4c] sm:$0xf]  ;;  %v2062_v58 = vor.u32 %v2365_v50, %v2059_v51  ;;  %v2403_v12 = vld [vmem:[%s3518_s7 + $0x98] sm:$0xff] }
 0x16b   :  { %1147 = vmatpush.bf16.msrb.mxu2 %v1882_v59  ;;  %v1787_v59 = vld [vmem:[%s3516_s5 + $0x158] sm:$0xf0] }
 0x16c   :  { %1160 = vmatpush.bf16.msrb.mxu3 %v2010_v61  ;;  %1122 = vmatmul.bf16.vlgmr.msrb.gmra.mxu0 %v3002_v17  ;;  %v1915_v61 = vld [vmem:[%s3516_s5 + $0x258] sm:$0xf0]  ;;  %v1790_v1 = vor.u32 %v2297_v57, %v1787_v59  ;;  %v2394_v59 = vld [vmem:[%s3518_s7 + $0x50] sm:$0xff] }
 0x16d   :  { %1166 = vmatpush.bf16.msra.mxu0 %v1742_v56  ;;  %1135 = vmatmul.bf16.vlgmr.msrb.gmra.mxu1 %v3014_v22  ;;  %v1659_v56 = vld [vmem:[%s3516_s5 + $0x58] sm:$0xf0] }
 0x16e   :  { %1179 = vmatpush.bf16.msra.mxu1 %v1870_v60  ;;  %1148 = vmatmul.bf16.vlgmr.msrb.gmra.mxu2 %v3027_v27  ;;  %v2329_v60 = vld [vmem:[%s3516_s5 + $0x24c] sm:$0xf]  ;;  %v1662_v0 = vor.u32 %v2265_v55, %v1659_v56  ;;  %v2395_v55 = vld [vmem:[%s3518_s7 + $0x58] sm:$0xff] }
 0x16f   :  { %1192 = vmatpush.bf16.msra.mxu2 %v1998_v62  ;;  %1161 = vmatmul.bf16.vlgmr.msrb.gmra.mxu3 %v3038_v28  ;;  %v2361_v62 = vld [vmem:[%s3516_s5 + $0x34c] sm:$0xf]  ;;  %v2407_v56 = vld [vmem:[%s3518_s7 + $0xb8] sm:$0xff] }
 0x170   :  { %1205 = vmatpush.bf16.msra.mxu3 %v2126_v2  ;;  %v1918_v2 = vor.u32 %v2329_v60, %v1915_v61  ;;  %v2046_v8 = vor.u32 %v2361_v62, %v2043_v63  ;;  %v2406_v60 = vld [vmem:[%s3518_s7 + $0xb0] sm:$0xff]  ;;  %v363_v62 = vperm.slane %v3417_v39, 1 }
 0x171   :  { %1167 = vmatpush.bf16.msra.mxu0 %v1726_v10  ;;  %v2325_v10 = vld [vmem:[%s3516_s5 + $0x22c] sm:$0xf] }
 0x172   :  { %1180 = vmatpush.bf16.msra.mxu1 %v1854_v13  ;;  %v1899_v13 = vld [vmem:[%s3516_s5 + $0x238] sm:$0xf0] }
 0x173   :  { %1193 = vmatpush.bf16.msra.mxu2 %v1982_v14  ;;  %v2357_v14 = vld [vmem:[%s3516_s5 + $0x32c] sm:$0xf] }
 0x174   :  { %1206 = vmatpush.bf16.msra.mxu3 %v2110_v21  ;;  %v1902_v21 = vor.u32 %v2325_v10, %v1899_v13  ;;  %v2030_v25 = vor.u32 %v2357_v14, %v2027_v15  ;;  %v2392_v13 = vld [vmem:[%s3518_s7 + $0x40] sm:$0xff] }
 0x175   :  { %1168 = vmatpush.bf16.msra.mxu0 %v1710_v32  ;;  %v2321_v32 = vld [vmem:[%s3516_s5 + $0x20c] sm:$0xf]  ;;  %v2404_v14 = vld [vmem:[%s3518_s7 + $0xa0] sm:$0xff] }
 0x176   :  { %1181 = vmatpush.bf16.msra.mxu1 %v1838_v7  ;;  %v1883_v7 = vld [vmem:[%s3516_s5 + $0x218] sm:$0xf0] }
 0x177   :  { %1194 = vmatpush.bf16.msra.mxu2 %v1966_v30  ;;  %v2353_v30 = vld [vmem:[%s3516_s5 + $0x30c] sm:$0xf] }
 0x178   :  { %1207 = vmatpush.bf16.msra.mxu3 %v2094_v35  ;;  %v1886_v35 = vor.u32 %v2321_v32, %v1883_v7  ;;  %v2014_v36 = vor.u32 %v2353_v30, %v2011_v31  ;;  %v2402_v7 = vld [vmem:[%s3518_s7 + $0x90] sm:$0xff] }
 0x179   :  { %1169 = vmatpush.bf16.msra.mxu0 %v1694_v42  ;;  %v2398_v42 = vld [vmem:[%s3518_s7 + $0x70] sm:$0xff] }
 0x17a   :  { %1182 = vmatpush.bf16.msra.mxu1 %v1822_v43  ;;  %v362_v43 = vperm.slane %v3417_v39, 0 }
 0x17b   :  { %1195 = vmatpush.bf16.msra.mxu2 %v1950_v44 }
 0x17c   :  { %1208 = vmatpush.bf16.msra.mxu3 %v2078_v46 }
 0x17d   :  { %1170 = vmatpush.bf16.msra.mxu0 %v1678_v52 }
 0x17e   :  { %1183 = vmatpush.bf16.msra.mxu1 %v1806_v53 }
 0x17f   :  { %1196 = vmatpush.bf16.msra.mxu2 %v1934_v54 }
 0x180   :  { %1209 = vmatpush.bf16.msra.mxu3 %v2062_v58 }
 0x181   :  { %1171 = vmatpush.bf16.msra.mxu0 %v1662_v0 }
 0x182   :  { %1184 = vmatpush.bf16.msra.mxu1 %v1790_v1 }
 0x183   :  { %1197 = vmatpush.bf16.msra.mxu2 %v1918_v2 }
 0x184   :  { %1210 = vmatpush.bf16.msra.mxu3 %v2046_v8 }
 0x185   :  { %1172 = vmatpush.bf16.msra.mxu0 %v1646_v16 }
 0x186   :  { %1185 = vmatpush.bf16.msra.mxu1 %v1774_v20 }
 0x187   :  { %1198 = vmatpush.bf16.msra.mxu2 %v1902_v21 }
 0x188   :  { %1211 = vmatpush.bf16.msra.mxu3 %v2030_v25 }
 0x189   :  { %1173 = vmatpush.bf16.msra.mxu0 %v1630_v33  ;;  %v364_v33 = vperm.slane %v3417_v39, 2 }
 0x18a   :  { %1186 = vmatpush.bf16.msra.mxu1 %v1758_v34 }
 0x18b   :  { %1199 = vmatpush.bf16.msra.mxu2 %v1886_v35 }
 0x18c   :  { %1212 = vmatpush.bf16.msra.mxu3 %v2014_v36  ;;  %1174 = vmatmul.bf16.vlgmr.msra.gmra.mxu0 %v3002_v17  ;;  %v2389_v17 = vld [vmem:[%s3518_s7 + $0x28] sm:$0xff] }
 0x18d   :  { %1187 = vmatmul.bf16.vlgmr.msra.gmra.mxu1 %v3014_v22  ;;  %1522 = vmatpush.bf16.msrb.mxu0 %v2391_v37  ;;  %v2388_v22 = vld [vmem:[%s3518_s7 + $0x20] sm:$0xff] }
 0x18e   :  { %1200 = vmatmul.bf16.vlgmr.msra.gmra.mxu2 %v3027_v27  ;;  %v2387_v27 = vld [vmem:[%s3518_s7 + $0x18] sm:$0xff] }
 0x18f   :  { %1213 = vmatmul.bf16.vlgmr.msra.gmra.mxu3 %v3038_v28  ;;  %v2399_v28 = vld [vmem:[%s3518_s7 + $0x78] sm:$0xff]  ;;  %1548 = vmatpush.bf16.msrb.mxu2 %v2407_v56 }
 0x190   :  { %1535 = vmatpush.bf16.msrb.mxu1 %v2399_v28 }
 0x191   :  { %1523 = vmatpush.bf16.msrb.mxu0 %v2390_v38 }
 0x193   :  { %1549 = vmatpush.bf16.msrb.mxu2 %v2406_v60 }
 0x194   :  { %1536 = vmatpush.bf16.msrb.mxu1 %v2398_v42 }
 0x195   :  { %1524 = vmatpush.bf16.msrb.mxu0 %v2389_v17  ;;  %v2401_v17 = vld [vmem:[%s3518_s7 + $0x88] sm:$0xff] }
 0x197   :  { %1550 = vmatpush.bf16.msrb.mxu2 %v2405_v5  ;;  %v365_v5 = vperm.slane %v3417_v39, 3 }
 0x198   :  { %1537 = vmatpush.bf16.msrb.mxu1 %v2397_v41 }
 0x199   :  { %1525 = vmatpush.bf16.msrb.mxu0 %v2388_v22 }
 0x19b   :  { %1551 = vmatpush.bf16.msrb.mxu2 %v2404_v14  ;;  %v2408_v14 = vld [vmem:[%s3518_s7 + $0xc0] sm:$0xff] }
 0x19c   :  { %1538 = vmatpush.bf16.msrb.mxu1 %v2396_v48 }
 0x19d   :  { %1526 = vmatpush.bf16.msrb.mxu0 %v2387_v27 }
 0x19f   :  { %1552 = vmatpush.bf16.msrb.mxu2 %v2403_v12 }
 0x1a0   :  { %1539 = vmatpush.bf16.msrb.mxu1 %v2395_v55 }
 0x1a1   :  { %1527 = vmatpush.bf16.msrb.mxu0 %v2386_v40 }
 0x1a3   :  { %1553 = vmatpush.bf16.msrb.mxu2 %v2402_v7 }
 0x1a4   :  { %1540 = vmatpush.bf16.msrb.mxu1 %v2394_v59 }
 0x1a5   :  { %1528 = vmatpush.bf16.msrb.mxu0 %v2385_v24 }
 0x1a7   :  { %1554 = vmatpush.bf16.msrb.mxu2 %v2401_v17 }
 0x1a8   :  { %1541 = vmatpush.bf16.msrb.mxu1 %v2393_v4  ;;  %v2410_v4 = vld [vmem:[%s3518_s7 + $0xd0] sm:$0xff] }
 0x1a9   :  { %1529 = vmatpush.bf16.msrb.mxu0 %v2384_v47 }
 0x1ac   :  { %1542 = vmatpush.bf16.msrb.mxu1 %v2392_v13 }
 0x1c9   :  { %v1019_v44 = vpop.f32.mrf.mxu0 }
 0x1ca   :  { %v1032_v45 = vpop.f32.mrf.mxu1  ;;  %v1020_v46 = vadd.f32 %v1019_v44, %v362_v43  ;;  %v2400_v44 = vld [vmem:[%s3518_s7 + $0x80] sm:$0xff] }
 0x1cb   :  { %1555 = vmatpush.bf16.msrb.mxu2 %v2400_v44 }
 0x1cc   :  { %v1033_v49 = vadd.f32 %v1032_v45, %v1020_v46  ;;  %v2415_v45 = vld [vmem:[%s3518_s7 + $0xf8] sm:$0xff] }
 0x1cd   :  { %1561 = vmatpush.bf16.msrb.mxu3 %v2415_v45 }
 0x1d1   :  { %v1045_v50 = vpop.f32.mrf.mxu2  ;;  %v1021_v51 = vpop.f32.mrf.mxu0 }
 0x1d2   :  { %v1046_v52 = vadd.f32 %v1045_v50, %v1033_v49  ;;  %v1058_v53 = vpop.f32.mrf.mxu3  ;;  %v1034_v54 = vpop.f32.mrf.mxu1 }
 0x1d3   :  { %v2413_v54 = vld [vmem:[%s3518_s7 + $0xe8] sm:$0xff] }
 0x1d4   :  { %v1059_v57 = vadd.f32 %v1058_v53, %v1046_v52 }
 0x1d6   :  { %v1218_v58 = vmul.f32 %v1059_v57, %v1059_v57 }
 0x1d8   :  { %v1222_v61 = vmul.f32 %v1218_v58, %v1059_v57 }
 0x1d9   :  { %v1047_v63 = vpop.f32.mrf.mxu2  ;;  %v1071_v0 = vpop.f32.mrf.mxu0 }
 0x1da   :  { %v1226_v1 = vmul.f32 0.044715, %v1222_v61  ;;  %v1060_v2 = vpop.f32.mrf.mxu3  ;;  %v1084_v3 = vpop.f32.mrf.mxu1  ;;  %v1072_v9 = vadd.f32 %v1071_v0, %v363_v62  ;;  %v2412_v61 = vld [vmem:[%s3518_s7 + $0xe0] sm:$0xff] }
 0x1db   :  { %v2411_v2 = vld [vmem:[%s3518_s7 + $0xd8] sm:$0xff] }
 0x1dc   :  { %v1230_v8 = vadd.f32 %v1226_v1, %v1059_v57  ;;  %v1085_v15 = vadd.f32 %v1084_v3, %v1072_v9 }
 0x1de   :  { %v1234_v10 = vmul.f32 0.7978846, %v1230_v8 }
 0x1e0   :  { %2431 = vtanh.f32 %v1234_v10 }
 0x1e1   :  { %v1097_v16 = vpop.f32.mrf.mxu2  ;;  %v1073_v20 = vpop.f32.mrf.mxu0 }
 0x1e2   :  { %v1098_v21 = vadd.f32 %v1097_v16, %v1085_v15  ;;  %v1110_v19 = vpop.f32.mrf.mxu3  ;;  %v1086_v23 = vpop.f32.mrf.mxu1 }
 0x1e4   :  { %v1111_v25 = vadd.f32 %v1110_v19, %v1098_v21 }
 0x1e6   :  { %v2432_v29 = vpop.eup %2431  ;;  %v1219_v32 = vmul.f32 %v1111_v25, %v1111_v25 }
 0x1e7   :  { %v1242_v30 = vadd.f32 1.0, %v2432_v29 }
 0x1e8   :  { %v1223_v31 = vmul.f32 %v1219_v32, %v1111_v25 }
 0x1e9   :  { %v1246_v34 = vmul.f32 0.5, %v1242_v30  ;;  %v1099_v35 = vpop.f32.mrf.mxu2  ;;  %v1123_v38 = vpop.f32.mrf.mxu0 }
 0x1ea   :  { %v1227_v36 = vmul.f32 0.044715, %v1223_v31  ;;  %v1112_v37 = vpop.f32.mrf.mxu3  ;;  %v1136_v27 = vpop.f32.mrf.mxu1  ;;  %v1124_v40 = vadd.f32 %v1123_v38, %v364_v33 }
 0x1eb   :  { %v1250_v22 = vmul.f32 %v1246_v34, %v1059_v57 }
 0x1ec   :  { %v1231_v28 = vadd.f32 %v1227_v36, %v1111_v25  ;;  %v1137_v41 = vadd.f32 %v1136_v27, %v1124_v40 }
 0x1ed   :  { %v1254_v42 = vadd.f32 %v1250_v22, %v2984_v6  ;;  %v2414_v6 = vld [vmem:[%s3518_s7 + $0xf0] sm:$0xff] }
 0x1ee   :  { %v1235_v43 = vmul.f32 0.7978846, %v1231_v28  ;;  %1562 = vmatpush.bf16.msrb.mxu3 %v2414_v6 }
 0x1ef   :  { %v1258_v24 = vpack.c.bf16 %v1254_v42, %v1254_v42 }
 0x1f0   :  { %2433 = vtanh.f32 %v1235_v43 }
 0x1f1   :  { %v1149_v46 = vpop.f32.mrf.mxu2  ;;  %1530 = vmatmul.bf16.vlgmr.msrb.gmra.mxu0 %v1258_v24  ;;  %v1125_v49 = vpop.f32.mrf.mxu0 }
 0x1f2   :  { %v1150_v47 = vadd.f32 %v1149_v46, %v1137_v41  ;;  %v1162_v48 = vpop.f32.mrf.mxu3  ;;  %v1138_v50 = vpop.f32.mrf.mxu1  ;;  %1563 = vmatpush.bf16.msrb.mxu3 %v2413_v54  ;;  %v2418_v41 = vld [vmem:[%s3519_s8] ss:$0 sm:$0xff]  ;;  %s1600_s8 = sshll.u32 %s2470_s1, 4  ;;  %s1601_s8 = int_to_ptr.vmem [resolvable:$true] %s1600_s8 }
 0x1f4   :  { %v1163_v51 = vadd.f32 %v1162_v48, %v1150_v47 }
 0x1f6   :  { %v2434_v52 = vpop.eup %2433  ;;  %v1220_v53 = vmul.f32 %v1163_v51, %v1163_v51  ;;  %1564 = vmatpush.bf16.msrb.mxu3 %v2412_v61 }
 0x1f7   :  { %v1243_v55 = vadd.f32 1.0, %v2434_v52 }
 0x1f8   :  { %v1224_v56 = vmul.f32 %v1220_v53, %v1163_v51 }
 0x1f9   :  { %v1247_v57 = vmul.f32 0.5, %v1243_v55  ;;  %v1151_v58 = vpop.f32.mrf.mxu2 }
 0x1fa   :  { %v1228_v59 = vmul.f32 0.044715, %v1224_v56  ;;  %v1164_v60 = vpop.f32.mrf.mxu3  ;;  %1565 = vmatpush.bf16.msrb.mxu3 %v2411_v2 }
 0x1fb   :  { %v1251_v62 = vmul.f32 %v1247_v57, %v1111_v25 }
 0x1fc   :  { %v1232_v63 = vadd.f32 %v1228_v59, %v1163_v51 }
 0x1fd   :  { %v1255_v0 = vadd.f32 %v1251_v62, %v2992_v11  ;;  %v2409_v11 = vld [vmem:[%s3518_s7 + $0xc8] sm:$0xff] }
 0x1fe   :  { %v1236_v1 = vmul.f32 0.7978846, %v1232_v63  ;;  %1566 = vmatpush.bf16.msrb.mxu3 %v2410_v4 }
 0x1ff   :  { %v1259_v3 = vpack.c.bf16 %v1255_v0, %v1255_v0 }
 0x200   :  { %2435 = vtanh.f32 %v1236_v1 }
 0x201   :  { %1543 = vmatmul.bf16.vlgmr.msrb.gmra.mxu1 %v1259_v3 }
 0x202   :  { %1567 = vmatpush.bf16.msrb.mxu3 %v2409_v11 }
 0x206   :  { %v2436_v8 = vpop.eup %2435  ;;  %1568 = vmatpush.bf16.msrb.mxu3 %v2408_v14 }
 0x207   :  { %v1244_v9 = vadd.f32 1.0, %v2436_v8 }
 0x209   :  { %v1175_v10 = vpop.f32.mrf.mxu0  ;;  %v1248_v15 = vmul.f32 0.5, %v1244_v9 }
 0x20a   :  { %v1188_v13 = vpop.f32.mrf.mxu1  ;;  %v1176_v16 = vadd.f32 %v1175_v10, %v365_v5 }
 0x20b   :  { %v1252_v20 = vmul.f32 %v1248_v15, %v1163_v51 }
 0x20c   :  { %v1189_v21 = vadd.f32 %v1188_v13, %v1176_v16 }
 0x20d   :  { %v1256_v39 = vadd.f32 %v1252_v20, %v3004_v18 }
 0x20f   :  { %v1260_v29 = vpack.c.bf16 %v1256_v39, %v1256_v39 }
 0x211   :  { %v1201_v19 = vpop.f32.mrf.mxu2  ;;  %v1177_v25 = vpop.f32.mrf.mxu0  ;;  %1556 = vmatmul.bf16.vlgmr.msrb.gmra.mxu2 %v1260_v29 }
 0x212   :  { %v1202_v23 = vadd.f32 %v1201_v19, %v1189_v21  ;;  %v1214_v12 = vpop.f32.mrf.mxu3  ;;  %v1190_v32 = vpop.f32.mrf.mxu1 }
 0x214   :  { %v1215_v7 = vadd.f32 %v1214_v12, %v1202_v23 }
 0x216   :  { %v1221_v30 = vmul.f32 %v1215_v7, %v1215_v7 }
 0x218   :  { %v1225_v31 = vmul.f32 %v1221_v30, %v1215_v7 }
 0x219   :  { %v1203_v33 = vpop.f32.mrf.mxu2 }
 0x21a   :  { %v1229_v34 = vmul.f32 0.044715, %v1225_v31  ;;  %v1216_v35 = vpop.f32.mrf.mxu3 }
 0x21c   :  { %v1233_v36 = vadd.f32 %v1229_v34, %v1215_v7 }
 0x21e   :  { %v1237_v37 = vmul.f32 0.7978846, %v1233_v36 }
 0x220   :  { %2437 = vtanh.f32 %v1237_v37 }
 0x226   :  { %v2438_v38 = vpop.eup %2437 }
 0x227   :  { %v1245_v17 = vadd.f32 1.0, %v2438_v38 }
 0x229   :  { %v1249_v22 = vmul.f32 0.5, %v1245_v17 }
 0x22b   :  { %v1253_v18 = vmul.f32 %v1249_v22, %v1215_v7 }
 0x22d   :  { %v1257_v27 = vadd.f32 %v1253_v18, %v3016_v26 }
 0x22f   :  { %v1261_v28 = vpack.c.bf16 %v1257_v27, %v1257_v27 }
 0x231   :  { %1569 = vmatmul.bf16.vlgmr.msrb.gmra.mxu3 %v1261_v28 }
 0x26e   :  { %v1531_v40 = vpop.f32.mrf.mxu0 }
 0x26f   :  { %v1532_v46 = vadd.f32 %v2418_v41, %v1531_v40 }
 0x276   :  { %v1533_v42 = vpop.f32.mrf.mxu0 }
 0x27e   :  { %v1544_v43 = vpop.f32.mrf.mxu1 }
 0x27f   :  { %v1545_v47 = vadd.f32 %v1544_v43, %v1532_v46 }
 0x286   :  { %v1546_v44 = vpop.f32.mrf.mxu1 }
 0x294   :  { %v1557_v45 = vpop.f32.mrf.mxu2 }
 0x295   :  { %v1558_v48 = vadd.f32 %v1557_v45, %v1545_v47 }
 0x29c   :  { %v1559_v24 = vpop.f32.mrf.mxu2 }
 0x2b4   :  { %v1570_v49 = vpop.f32.mrf.mxu3 }
 0x2b5   :  { %v1571_v6 = vadd.f32 %v1570_v49, %v1558_v48 }
 0x2b7   :  { %v2255_v50 = vmul.f32 -1.442695, %v1571_v6 }
 0x2b9   :  { %2439 = vpow2.f32 %v2255_v50 }
 0x2bc   :  { %v1572_v26 = vpop.f32.mrf.mxu3 }
 0x2bf   :  { %v2440_v51 = vpop.eup %2439 }
 0x2c0   :  { %v1577_v52 = vadd.f32 1.0, %v2440_v51 }
 0x2c2   :  { %2441 = vrcp.f32 %v1577_v52  ;;  %v1589_v56 = vand.u32 2147483648, %v1577_v52  ;;  %v1587_v58 = vand.u32 2147483647, %v1577_v52  ;;  %vm1583_vm7 = vweird.f32 %v1577_v52 }
 0x2c4   :  { %v1590_v60 = vor.u32 1.1754944e-38, %v1589_v56  ;;  %vm1588_vm10 = vcmp.eq.f32.partialorder %v1587_v58, 8.507059e+37 }
 0x2c8   :  { %v2442_v53 = vpop.eup %2441 }
 0x2c9   :  { %v1579_v54 = vmul.f32 %v2442_v53, %v1577_v52  ;;  %vm1584_vm6 = vweird.f32 %v2442_v53 }
 0x2ca   :  { %vm1585_vm8 = vmor %vm1583_vm7, %vm1584_vm6 }
 0x2cb   :  { %v1580_v55 = vsub.f32 1.0, %v1579_v54 }
 0x2cd   :  { %v1581_v57 = vmul.f32 %v2442_v53, %v1580_v55 }
 0x2cf   :  { %v1582_v59 = vadd.f32 %v2442_v53, %v1581_v57 }
 0x2d1   :  { %v1586_v61 = vsel %vm1585_vm8, %v2442_v53, %v1582_v59 }
 0x2d2   :  { %v1591_v62 = vsel %vm1588_vm10, %v1590_v60, %v1586_v61 }
 0x2d3   :  { %1594 = vst.msk [vmem:[#allocation2] sm:$0xff] %vm1593_vm9, %v1591_v62 }
 0x2d4   :  { %1605 = dma.vmem_to_hbm [thread:$0]  %s1601_s8, 128, %s1603_s13, [#allocation3]  }
 0x2d5   :  { %2467 = dma.done.wait [#allocation3], 128  }
 0x2d6   :  { %2468 = vsyncadd [#allocation3], 4294967168 }
 0x2d7   :  { %1610 = vsyncpa [#allocation3], 1 }

</bundles_post_ra>
